<compile_context>
chip_gen: v7x
topology: tpu7x:2x2x1
jax: 0.10.0
libtpu: 0.0.40
codegen_flags: <defaults>
</compile_context>

<pallas_src>
import jax
import jax.numpy as jnp
from jax.experimental import pallas as pl
from jax.experimental.pallas import tpu as pltpu


# --------------------------------------------------------------------------
# Plain-JAX glue: interpolation / difference matrices (parameter-like setup)
# --------------------------------------------------------------------------
def bilinear_matrix(out_size, in_size):
    # Row-interpolation matrix reproducing F.interpolate(mode='bilinear',
    # align_corners=False) along one axis.
    scale = in_size / out_size
    i = jnp.arange(out_size, dtype=jnp.float32)
    src = (i + 0.5) * scale - 0.5
    src = jnp.maximum(src, 0.0)                     # PyTorch clamps negatives to 0
    lo = jnp.minimum(jnp.floor(src).astype(jnp.int32), in_size - 1)
    hi = jnp.minimum(lo + 1, in_size - 1)
    w_hi = src - lo.astype(jnp.float32)
    w_lo = 1.0 - w_hi
    rows = jnp.arange(out_size)
    m = jnp.zeros((out_size, in_size), jnp.float32)
    m = m.at[rows, lo].add(w_lo)
    m = m.at[rows, hi].add(w_hi)
    return m


def nearest_matrix(out_size, in_size):
    # Reproduces F.interpolate(mode='nearest') along one axis.
    scale = in_size / out_size
    i = jnp.arange(out_size, dtype=jnp.float32)
    src = jnp.minimum(jnp.floor(i * scale).astype(jnp.int32), in_size - 1)
    m = jnp.zeros((out_size, in_size), jnp.float32)
    m = m.at[jnp.arange(out_size), src].set(1.0)
    return m


def backward_diff_matrix(n):
    # (D @ x)[0] = 0 ; (D @ x)[i] = x[i] - x[i-1]   (diff + leading zero-pad)
    d = jnp.eye(n, dtype=jnp.float32) - jnp.eye(n, k=-1, dtype=jnp.float32)
    return d.at[0, :].set(0.0)


# --------------------------------------------------------------------------
# Fused kernel: extracted_img (VMEM only) -> alb (rgb-diff + pad + bilinear +
# abs + sum), per-sample max, 7 relu'd depth heads, masked-depth + nearest
# resize.  One grid step per batch element, all channels handled in-step.
# --------------------------------------------------------------------------
def fused_kernel(mask_ref, img_ref, s_ref, wwt_ref, ct_ref, nh_ref, nwt_ref,
                 wd_ref, bd_ref,
                 d_ref, alb_ref, drs_ref, maxv_ref):
    C = img_ref.shape[1]                       # 3
    Ho = nh_ref.shape[0]

    m = mask_ref[0, 0]                         # (H, W)
    S = s_ref[...]                             # (2*Ho, H)  == [Wh@Dh ; Wh]
    WwT = wwt_ref[...]                         # (W, Wo)    == Ww^T
    CT = ct_ref[...]                           # (W, Wo)    == (Ww@Dw)^T
    Nh = nh_ref[...]                           # (Ho, H)
    NwT = nwt_ref[...]                         # (W, Wo)

    # extracted_img = mask * images  (never written to HBM)
    e = [m * img_ref[0, c] for c in range(C)]  # C x (H, W)

    # ---- alb path: r0 = |(Wh@Dh) e Ww^T| , r1 = |Wh e (Ww@Dw)^T| ----------
    # Stacked left operator -> one MXU matmul per channel; the two right
    # matmuls are issued once on the channel-stacked (C*Ho, W) intermediates.
    tops, bots = [], []
    for c in range(C):
        L = jnp.dot(S, e[c], preferred_element_type=jnp.float32)   # (2Ho, W)
        tops.append(L[:Ho])
        bots.append(L[Ho:])
    Ltop = jnp.concatenate(tops, axis=0)       # (C*Ho, W)  rows of (Wh@Dh)@e_c
    Lbot = jnp.concatenate(bots, axis=0)       # (C*Ho, W)  rows of  Wh    @e_c
    r0 = jnp.abs(jnp.dot(Ltop, WwT, preferred_element_type=jnp.float32))
    r1 = jnp.abs(jnp.dot(Lbot, CT, preferred_element_type=jnp.float32))
    alb = r0 + r1                              # (C*Ho, Wo), un-normalized
    alb_ref[0] = alb                           # channel-stacked along rows
    # Per-sample max (global max is reduced wrapper-side -> grid stays parallel).
    maxv_ref[...] = jnp.max(alb).reshape(1, 1, 1)

    # ---- depth heads (1x1-conv stand-in) + fused ReLU, on the VPU ---------
    d0 = None
    for k in range(7):
        dk = (wd_ref[k, 0] * e[0] + wd_ref[k, 1] * e[1] +
              wd_ref[k, 2] * e[2] + bd_ref[k])
        dk = jnp.maximum(dk, 0.0)              # d_k = relu(pred_depths[k])
        d_ref[0, k] = dk
        if k == 0:
            d0 = dk

    # ---- masked_depth = mask * d1 ; nearest resize to bm_img_size ---------
    md = m * d0                                # (H, W), VMEM only
    t = jnp.dot(Nh, md, preferred_element_type=jnp.float32)        # (Ho, W)
    drs_ref[0] = jnp.dot(t, NwT, preferred_element_type=jnp.float32)


def fused_stage(mask, images, S, WwT, CT, Nh, NwT, wd, bd, Ho, Wo):
    N, C, H, W = images.shape
    out_shape = (
        jax.ShapeDtypeStruct((N, 7, H, W), jnp.float32),       # d_all (relu'd)
        jax.ShapeDtypeStruct((N, C * Ho, Wo), jnp.float32),    # alb, un-normalized, channel-stacked
        jax.ShapeDtypeStruct((N, Ho, Wo), jnp.float32),        # nearest-resized masked depth
        jax.ShapeDtypeStruct((N, 1, 1), jnp.float32),          # per-sample max(alb)
    )
    return pl.pallas_call(
        fused_kernel,
        out_shape=out_shape,
        grid=(N,),
        in_specs=[
            pl.BlockSpec((1, 1, H, W), lambda n: (n, 0, 0, 0)),   # mask
            pl.BlockSpec((1, C, H, W), lambda n: (n, 0, 0, 0)),   # images
            pl.BlockSpec((2 * Ho, H), lambda n: (0, 0)),          # [Wh@Dh ; Wh]
            pl.BlockSpec((W, Wo), lambda n: (0, 0)),              # Ww^T
            pl.BlockSpec((W, Wo), lambda n: (0, 0)),              # (Ww@Dw)^T
            pl.BlockSpec((Ho, H), lambda n: (0, 0)),              # nearest rows
            pl.BlockSpec((W, Wo), lambda n: (0, 0)),              # nearest cols^T
            pl.BlockSpec(memory_space=pltpu.MemorySpace.SMEM),    # (7,3) depth weights
            pl.BlockSpec(memory_space=pltpu.MemorySpace.SMEM),    # (7,)  depth bias
        ],
        out_specs=(
            pl.BlockSpec((1, 7, H, W), lambda n: (n, 0, 0, 0)),
            pl.BlockSpec((1, C * Ho, Wo), lambda n: (n, 0, 0)),
            pl.BlockSpec((1, Ho, Wo), lambda n: (n, 0, 0)),
            pl.BlockSpec((1, 1, 1), lambda n: (n, 0, 0)),
        ),
        # No resident accumulator -> batch axis can shard across v7x's 2 TCs.
        # For production H,W also tile H in these BlockSpecs (64 MiB VMEM on v7x).
        compiler_params=pltpu.CompilerParams(
            dimension_semantics=("parallel",),
            vmem_limit_bytes=64 * 1024 * 1024),
    )(mask, images, S, WwT, CT, Nh, NwT, wd, bd)


# --------------------------------------------------------------------------
# bm head kernel: alb /= global max ; rgbd = cat([alb, depth]) ; bm stand-in.
# Runs after the global-max barrier (the only data that must cross HBM).
# --------------------------------------------------------------------------
def bm_kernel(alb_ref, drs_ref, maxv_ref, wb_ref, bb_ref, o_ref):
    Ho = drs_ref.shape[1]
    inv = 1.0 / maxv_ref[0, 0]                 # mirrors reference (no epsilon)
    a = [alb_ref[0, c * Ho:(c + 1) * Ho, :] * inv for c in range(3)]
    dd = drs_ref[0]
    for k in range(2):
        o_ref[0, k] = (wb_ref[k, 0] * a[0] + wb_ref[k, 1] * a[1] +
                       wb_ref[k, 2] * a[2] + wb_ref[k, 3] * dd + bb_ref[k])


def bm_head(alb_cs, drs, maxv, wb, bb, Ho, Wo):
    N = alb_cs.shape[0]
    return pl.pallas_call(
        bm_kernel,
        out_shape=jax.ShapeDtypeStruct((N, 2, Ho, Wo), jnp.float32),
        grid=(N,),
        in_specs=[
            pl.BlockSpec((1, 3 * Ho, Wo), lambda n: (n, 0, 0)),
            pl.BlockSpec((1, Ho, Wo), lambda n: (n, 0, 0)),
            pl.BlockSpec(memory_space=pltpu.MemorySpace.SMEM),    # (1,1) global max
            pl.BlockSpec(memory_space=pltpu.MemorySpace.SMEM),    # (2,4) bm weights
            pl.BlockSpec(memory_space=pltpu.MemorySpace.SMEM),    # (2,)  bm bias
        ],
        out_specs=pl.BlockSpec((1, 2, Ho, Wo), lambda n: (n, 0, 0, 0)),
        compiler_params=pltpu.CompilerParams(
            dimension_semantics=("parallel",),
            vmem_limit_bytes=64 * 1024 * 1024),
    )(alb_cs, drs, maxv, wb, bb)


# --------------------------------------------------------------------------
# Full forward (mirrors u2net_joint_mobilevit_onlydbm_rgbdiff.forward)
# --------------------------------------------------------------------------
def forward(mask, images, bm_img_size, params):
    wd, bd, wb, bb = params
    N, C, H, W = images.shape
    Ho, Wo = bm_img_size

    # Precomputed linear operators (glue).
    Wh = bilinear_matrix(Ho, H)                 # (Ho, H)
    Ww = bilinear_matrix(Wo, W)                 # (Wo, W)
    Dh = backward_diff_matrix(H)                # (H, H)
    Dw = backward_diff_matrix(W)                # (W, W)
    A = Wh @ Dh                                 # folds diff_h + pad + bilinear rows
    S = jnp.concatenate([A, Wh], axis=0)        # (2*Ho, H) stacked left operators
    WwT = Ww.T                                  # (W, Wo)
    CT = (Ww @ Dw).T                            # folds diff_w + pad + bilinear cols
    Nh = nearest_matrix(Ho, H)                  # (Ho, H)
    NwT = nearest_matrix(Wo, W).T               # (W, Wo)

    d_all, alb_cs, drs, maxv_per_n = fused_stage(
        mask, images, S, WwT, CT, Nh, NwT, wd, bd, Ho, Wo)
    maxv = jnp.max(maxv_per_n).reshape(1, 1)    # tiny wrapper-side reduction
    pred_bm = bm_head(alb_cs, drs, maxv, wb, bb, Ho, Wo)

    # d_all[:, k:k+1] is d_{k+1} of the original module; returned whole to
    # avoid 7 wrapper-side slice copies (caller indexes as needed).
    return d_all, pred_bm


# --------------------------------------------------------------------------
# Pure-JAX reference (same stand-in submodules) for a sanity check
# --------------------------------------------------------------------------
def reference_forward(mask, images, bm_img_size, params):
    wd, bd, wb, bb = params
    N, C, H, W = images.shape
    Ho, Wo = bm_img_size
    Wh = bilinear_matrix(Ho, H)
    Ww = bilinear_matrix(Wo, W)
    Dh = backward_diff_matrix(H)
    Dw = backward_diff_matrix(W)
    Nh = nearest_matrix(Ho, H)
    Nw = nearest_matrix(Wo, W)

    ext = mask * images
    alb0 = jnp.einsum('oh,nchw,qw->ncoq', Wh @ Dh, ext, Ww)
    alb1 = jnp.einsum('oh,nchw,qw->ncoq', Wh, ext, Ww @ Dw)
    alb = jnp.abs(alb0) + jnp.abs(alb1)
    maxv = jnp.max(alb)
    alb = alb / maxv
    d_all = jax.nn.relu(jnp.einsum('kc,nchw->nkhw', wd, ext)
                        + bd[None, :, None, None])
    md = mask[:, 0] * d_all[:, 0]
    drs = jnp.einsum('oh,nhw,qw->noq', Nh, md, Nw)[:, None]
    rgbd = jnp.concatenate([alb, drs], axis=1)
    bm = jnp.einsum('kc,nchw->nkhw', wb, rgbd) + bb[None, :, None, None]
    return d_all, bm


# --------------------------------------------------------------------------
if __name__ == "__main__":
    N, H, W = 2, 16, 16
    bm_img_size = (8, 8)

    key = jax.random.PRNGKey(0)
    k1, k2, k3, k4, k5, k6 = jax.random.split(key, 6)

    mask = (jax.random.uniform(k1, (N, 1, H, W)) > 0.4).astype(jnp.float32)
    images = jax.random.normal(k2, (N, 3, H, W), dtype=jnp.float32)

    # Deterministic synthetic parameters for the stand-in submodules.
    # TODO(synk): depth_model / bm_model are externally injected nn.Modules in
    # the original code; replaced here with 1x1-conv stand-ins of the implied
    # interface (7 depth heads, 4ch->2ch bm head).
    wd = jax.random.normal(k3, (7, 3), dtype=jnp.float32) * 0.5
    bd = jax.random.normal(k4, (7,), dtype=jnp.float32) * 0.1
    wb = jax.random.normal(k5, (2, 4), dtype=jnp.float32) * 0.5
    bb = jax.random.normal(k6, (2,), dtype=jnp.float32) * 0.1
    params = (wd, bd, wb, bb)

    d_all, pred_bm = forward(mask, images, bm_img_size, params)
    d_all, pred_bm = jax.block_until_ready((d_all, pred_bm))

    # Sanity check vs pure-JAX reference.
    d_ref, bm_ref = reference_forward(mask, images, bm_img_size, params)
    assert d_all.shape == (N, 7, H, W)
    assert pred_bm.shape == (N, 2, bm_img_size[0], bm_img_size[1])
    assert jnp.allclose(d_all, d_ref, atol=1e-3, rtol=1e-3)
    assert jnp.allclose(pred_bm, bm_ref, atol=1e-3, rtol=1e-3)

    print("KERNEL_OK")
</pallas_src>

<mosaic_0001>
module attributes {stable_mosaic.version = 11 : i64} {
  func.func @fused_kernel(%arg0: i32, %arg1: memref<1x1x16x16xf32, #tpu.memory_space<vmem>>, %arg2: memref<1x3x16x16xf32, #tpu.memory_space<vmem>>, %arg3: memref<16x16xf32, #tpu.memory_space<vmem>>, %arg4: memref<16x8xf32, #tpu.memory_space<vmem>>, %arg5: memref<16x8xf32, #tpu.memory_space<vmem>>, %arg6: memref<8x16xf32, #tpu.memory_space<vmem>>, %arg7: memref<16x8xf32, #tpu.memory_space<vmem>>, %arg8: memref<7x3xf32, #tpu.memory_space<smem>>, %arg9: memref<7xf32, #tpu.memory_space<smem>>, %arg10: memref<1x7x16x16xf32, #tpu.memory_space<vmem>>, %arg11: memref<1x24x8xf32, #tpu.memory_space<vmem>>, %arg12: memref<1x8x8xf32, #tpu.memory_space<vmem>>, %arg13: memref<1x1x1xf32, #tpu.memory_space<vmem>>) attributes {dimension_semantics = [#tpu.dimension_semantics<parallel>], iteration_bounds = array<i64: 2>, scalar_prefetch = 0 : i64, scratch_operands = 0 : i64, tpu.core_type = #tpu.core_type<tc>, window_params = [{transform_indices = @transform_0, window_bounds = array<i64: 1, 1, 16, 16>}, {transform_indices = @transform_1, window_bounds = array<i64: 1, 3, 16, 16>}, {pipeline_mode = #tpu.pipeline_mode<synchronous>, transform_indices = @transform_2, window_bounds = array<i64: 16, 16>}, {pipeline_mode = #tpu.pipeline_mode<synchronous>, transform_indices = @transform_3, window_bounds = array<i64: 16, 8>}, {pipeline_mode = #tpu.pipeline_mode<synchronous>, transform_indices = @transform_4, window_bounds = array<i64: 16, 8>}, {pipeline_mode = #tpu.pipeline_mode<synchronous>, transform_indices = @transform_5, window_bounds = array<i64: 8, 16>}, {pipeline_mode = #tpu.pipeline_mode<synchronous>, transform_indices = @transform_6, window_bounds = array<i64: 16, 8>}, {transform_indices = @transform_7, window_bounds = array<i64: 7, 3>}, {transform_indices = @transform_8, window_bounds = array<i64: 7>}, {transform_indices = @transform_9, window_bounds = array<i64: 1, 7, 16, 16>}, {transform_indices = @transform_10, window_bounds = array<i64: 1, 24, 8>}, {transform_indices = @transform_11, window_bounds = array<i64: 1, 8, 8>}, {transform_indices = @transform_12, window_bounds = array<i64: 1, 1, 1>}]} {
    %c0 = arith.constant 0 : index
    %c0_0 = arith.constant 0 : index
    %c0_1 = arith.constant 0 : index
    %c0_2 = arith.constant 0 : index
    %0 = vector.load %arg1[%c0, %c0_0, %c0_1, %c0_2] : memref<1x1x16x16xf32, #tpu.memory_space<vmem>>, vector<1x1x16x16xf32>
    %1 = vector.shape_cast %0 : vector<1x1x16x16xf32> to vector<16x16xf32>
    %c0_3 = arith.constant 0 : index
    %c0_4 = arith.constant 0 : index
    %2 = vector.load %arg3[%c0_3, %c0_4] : memref<16x16xf32, #tpu.memory_space<vmem>>, vector<16x16xf32>
    %c0_5 = arith.constant 0 : index
    %c0_6 = arith.constant 0 : index
    %3 = vector.load %arg4[%c0_5, %c0_6] : memref<16x8xf32, #tpu.memory_space<vmem>>, vector<16x8xf32>
    %c0_7 = arith.constant 0 : index
    %c0_8 = arith.constant 0 : index
    %4 = vector.load %arg5[%c0_7, %c0_8] : memref<16x8xf32, #tpu.memory_space<vmem>>, vector<16x8xf32>
    %c0_9 = arith.constant 0 : index
    %c0_10 = arith.constant 0 : index
    %5 = vector.load %arg6[%c0_9, %c0_10] : memref<8x16xf32, #tpu.memory_space<vmem>>, vector<8x16xf32>
    %c0_11 = arith.constant 0 : index
    %c0_12 = arith.constant 0 : index
    %6 = vector.load %arg7[%c0_11, %c0_12] : memref<16x8xf32, #tpu.memory_space<vmem>>, vector<16x8xf32>
    %c0_13 = arith.constant 0 : index
    %c0_14 = arith.constant 0 : index
    %c0_15 = arith.constant 0 : index
    %c0_16 = arith.constant 0 : index
    %7 = vector.load %arg2[%c0_13, %c0_14, %c0_15, %c0_16] : memref<1x3x16x16xf32, #tpu.memory_space<vmem>>, vector<1x1x16x16xf32>
    %8 = vector.shape_cast %7 : vector<1x1x16x16xf32> to vector<16x16xf32>
    %9 = arith.mulf %1, %8 : vector<16x16xf32>
    %c0_17 = arith.constant 0 : index
    %c1 = arith.constant 1 : index
    %c0_18 = arith.constant 0 : index
    %c0_19 = arith.constant 0 : index
    %10 = vector.load %arg2[%c0_17, %c1, %c0_18, %c0_19] : memref<1x3x16x16xf32, #tpu.memory_space<vmem>>, vector<1x1x16x16xf32>
    %11 = vector.shape_cast %10 : vector<1x1x16x16xf32> to vector<16x16xf32>
    %12 = arith.mulf %1, %11 : vector<16x16xf32>
    %c0_20 = arith.constant 0 : index
    %c2 = arith.constant 2 : index
    %c0_21 = arith.constant 0 : index
    %c0_22 = arith.constant 0 : index
    %13 = vector.load %arg2[%c0_20, %c2, %c0_21, %c0_22] : memref<1x3x16x16xf32, #tpu.memory_space<vmem>>, vector<1x1x16x16xf32>
    %14 = vector.shape_cast %13 : vector<1x1x16x16xf32> to vector<16x16xf32>
    %15 = arith.mulf %1, %14 : vector<16x16xf32>
    %cst = arith.constant dense<0.000000e+00> : vector<16x16xf32>
    %16 = tpu.matmul %2, %9, %cst {dimension_numbers = #tpu.dot_dimension_numbers<[1], [0], [0], [1], [0, 0, 1, 1], [], []>} : vector<16x16xf32>, vector<16x16xf32>, vector<16x16xf32> -> vector<16x16xf32>
    %17 = vector.extract_strided_slice %16 {offsets = [0, 0], sizes = [8, 16], strides = [1, 1]} : vector<16x16xf32> to vector<8x16xf32>
    %18 = vector.extract_strided_slice %16 {offsets = [8, 0], sizes = [8, 16], strides = [1, 1]} : vector<16x16xf32> to vector<8x16xf32>
    %cst_23 = arith.constant dense<0.000000e+00> : vector<16x16xf32>
    %19 = tpu.matmul %2, %12, %cst_23 {dimension_numbers = #tpu.dot_dimension_numbers<[1], [0], [0], [1], [0, 0, 1, 1], [], []>} : vector<16x16xf32>, vector<16x16xf32>, vector<16x16xf32> -> vector<16x16xf32>
    %20 = vector.extract_strided_slice %19 {offsets = [0, 0], sizes = [8, 16], strides = [1, 1]} : vector<16x16xf32> to vector<8x16xf32>
    %21 = vector.extract_strided_slice %19 {offsets = [8, 0], sizes = [8, 16], strides = [1, 1]} : vector<16x16xf32> to vector<8x16xf32>
    %cst_24 = arith.constant dense<0.000000e+00> : vector<16x16xf32>
    %22 = tpu.matmul %2, %15, %cst_24 {dimension_numbers = #tpu.dot_dimension_numbers<[1], [0], [0], [1], [0, 0, 1, 1], [], []>} : vector<16x16xf32>, vector<16x16xf32>, vector<16x16xf32> -> vector<16x16xf32>
    %23 = vector.extract_strided_slice %22 {offsets = [0, 0], sizes = [8, 16], strides = [1, 1]} : vector<16x16xf32> to vector<8x16xf32>
    %24 = vector.extract_strided_slice %22 {offsets = [8, 0], sizes = [8, 16], strides = [1, 1]} : vector<16x16xf32> to vector<8x16xf32>
    %25 = tpu.concatenate %17, %20, %23 in 0 : vector<8x16xf32>, vector<8x16xf32>, vector<8x16xf32> -> vector<24x16xf32>
    %26 = tpu.concatenate %18, %21, %24 in 0 : vector<8x16xf32>, vector<8x16xf32>, vector<8x16xf32> -> vector<24x16xf32>
    %cst_25 = arith.constant dense<0.000000e+00> : vector<24x8xf32>
    %27 = tpu.matmul %25, %3, %cst_25 {dimension_numbers = #tpu.dot_dimension_numbers<[1], [0], [0], [1], [0, 0, 1, 1], [], []>} : vector<24x16xf32>, vector<16x8xf32>, vector<24x8xf32> -> vector<24x8xf32>
    %28 = math.absf %27 : vector<24x8xf32>
    %cst_26 = arith.constant dense<0.000000e+00> : vector<24x8xf32>
    %29 = tpu.matmul %26, %4, %cst_26 {dimension_numbers = #tpu.dot_dimension_numbers<[1], [0], [0], [1], [0, 0, 1, 1], [], []>} : vector<24x16xf32>, vector<16x8xf32>, vector<24x8xf32> -> vector<24x8xf32>
    %30 = math.absf %29 : vector<24x8xf32>
    %31 = arith.addf %28, %30 : vector<24x8xf32>
    %c0_27 = arith.constant 0 : index
    %c0_28 = arith.constant 0 : index
    %c0_29 = arith.constant 0 : index
    %32 = vector.load %arg11[%c0_27, %c0_28, %c0_29] : memref<1x24x8xf32, #tpu.memory_space<vmem>>, vector<1x24x8xf32>
    %33 = vector.shape_cast %32 : vector<1x24x8xf32> to vector<24x8xf32>
    %34 = vector.shape_cast %31 : vector<24x8xf32> to vector<1x24x8xf32>
    tpu.vector_store %arg11[%c0_27, %c0_28, %c0_29], %34 {strides = array<i32>} : memref<1x24x8xf32, #tpu.memory_space<vmem>>, vector<1x24x8xf32>,
    %35 = vector.shape_cast %31 : vector<24x8xf32> to vector<1x24x8xf32>
    %cst_30 = arith.constant dense<0xFF800000> : vector<1xf32>
    %36 = vector.multi_reduction <maximumf>, %35, %cst_30 [1, 2] : vector<1x24x8xf32> to vector<1xf32>
    %37 = vector.shape_cast %36 : vector<1xf32> to vector<1x1x1xf32>
    %38 = vector.extract %37[0, 0, 0] : f32 from vector<1x1x1xf32>
    %39 = vector.broadcast %38 : f32 to vector<1x1x1xf32>
    %c0_31 = arith.constant 0 : index
    %c0_32 = arith.constant 0 : index
    %c0_33 = arith.constant 0 : index
    %40 = vector.load %arg13[%c0_31, %c0_32, %c0_33] : memref<1x1x1xf32, #tpu.memory_space<vmem>>, vector<1x1x1xf32>
    tpu.vector_store %arg13[%c0_31, %c0_32, %c0_33], %39 {strides = array<i32>} : memref<1x1x1xf32, #tpu.memory_space<vmem>>, vector<1x1x1xf32>,
    %c0_34 = arith.constant 0 : index
    %c0_35 = arith.constant 0 : index
    %41 = memref.load %arg8[%c0_34, %c0_35] : memref<7x3xf32, #tpu.memory_space<smem>>
    %42 = vector.broadcast %41 : f32 to vector<16x16xf32>
    %43 = arith.mulf %42, %9 : vector<16x16xf32>
    %c0_36 = arith.constant 0 : index
    %c1_37 = arith.constant 1 : index
    %44 = memref.load %arg8[%c0_36, %c1_37] : memref<7x3xf32, #tpu.memory_space<smem>>
    %45 = vector.broadcast %44 : f32 to vector<16x16xf32>
    %46 = arith.mulf %45, %12 : vector<16x16xf32>
    %47 = arith.addf %43, %46 : vector<16x16xf32>
    %c0_38 = arith.constant 0 : index
    %c2_39 = arith.constant 2 : index
    %48 = memref.load %arg8[%c0_38, %c2_39] : memref<7x3xf32, #tpu.memory_space<smem>>
    %49 = vector.broadcast %48 : f32 to vector<16x16xf32>
    %50 = arith.mulf %49, %15 : vector<16x16xf32>
    %51 = arith.addf %47, %50 : vector<16x16xf32>
    %c0_40 = arith.constant 0 : index
    %52 = memref.load %arg9[%c0_40] : memref<7xf32, #tpu.memory_space<smem>>
    %53 = vector.broadcast %52 : f32 to vector<16x16xf32>
    %54 = arith.addf %51, %53 : vector<16x16xf32>
    %cst_41 = arith.constant 0.000000e+00 : f32
    %55 = vector.broadcast %cst_41 : f32 to vector<16x16xf32>
    %56 = arith.maximumf %54, %55 : vector<16x16xf32>
    %c0_42 = arith.constant 0 : index
    %c0_43 = arith.constant 0 : index
    %c0_44 = arith.constant 0 : index
    %c0_45 = arith.constant 0 : index
    %57 = vector.load %arg10[%c0_42, %c0_43, %c0_44, %c0_45] : memref<1x7x16x16xf32, #tpu.memory_space<vmem>>, vector<1x1x16x16xf32>
    %58 = vector.shape_cast %57 : vector<1x1x16x16xf32> to vector<16x16xf32>
    %59 = vector.shape_cast %56 : vector<16x16xf32> to vector<1x1x16x16xf32>
    tpu.vector_store %arg10[%c0_42, %c0_43, %c0_44, %c0_45], %59 {strides = array<i32>} : memref<1x7x16x16xf32, #tpu.memory_space<vmem>>, vector<1x1x16x16xf32>,
    %c1_46 = arith.constant 1 : index
    %c0_47 = arith.constant 0 : index
    %60 = memref.load %arg8[%c1_46, %c0_47] : memref<7x3xf32, #tpu.memory_space<smem>>
    %61 = vector.broadcast %60 : f32 to vector<16x16xf32>
    %62 = arith.mulf %61, %9 : vector<16x16xf32>
    %c1_48 = arith.constant 1 : index
    %c1_49 = arith.constant 1 : index
    %63 = memref.load %arg8[%c1_48, %c1_49] : memref<7x3xf32, #tpu.memory_space<smem>>
    %64 = vector.broadcast %63 : f32 to vector<16x16xf32>
    %65 = arith.mulf %64, %12 : vector<16x16xf32>
    %66 = arith.addf %62, %65 : vector<16x16xf32>
    %c1_50 = arith.constant 1 : index
    %c2_51 = arith.constant 2 : index
    %67 = memref.load %arg8[%c1_50, %c2_51] : memref<7x3xf32, #tpu.memory_space<smem>>
    %68 = vector.broadcast %67 : f32 to vector<16x16xf32>
    %69 = arith.mulf %68, %15 : vector<16x16xf32>
    %70 = arith.addf %66, %69 : vector<16x16xf32>
    %c1_52 = arith.constant 1 : index
    %71 = memref.load %arg9[%c1_52] : memref<7xf32, #tpu.memory_space<smem>>
    %72 = vector.broadcast %71 : f32 to vector<16x16xf32>
    %73 = arith.addf %70, %72 : vector<16x16xf32>
    %cst_53 = arith.constant 0.000000e+00 : f32
    %74 = vector.broadcast %cst_53 : f32 to vector<16x16xf32>
    %75 = arith.maximumf %73, %74 : vector<16x16xf32>
    %c0_54 = arith.constant 0 : index
    %c1_55 = arith.constant 1 : index
    %c0_56 = arith.constant 0 : index
    %c0_57 = arith.constant 0 : index
    %76 = vector.load %arg10[%c0_54, %c1_55, %c0_56, %c0_57] : memref<1x7x16x16xf32, #tpu.memory_space<vmem>>, vector<1x1x16x16xf32>
    %77 = vector.shape_cast %76 : vector<1x1x16x16xf32> to vector<16x16xf32>
    %78 = vector.shape_cast %75 : vector<16x16xf32> to vector<1x1x16x16xf32>
    tpu.vector_store %arg10[%c0_54, %c1_55, %c0_56, %c0_57], %78 {strides = array<i32>} : memref<1x7x16x16xf32, #tpu.memory_space<vmem>>, vector<1x1x16x16xf32>,
    %c2_58 = arith.constant 2 : index
    %c0_59 = arith.constant 0 : index
    %79 = memref.load %arg8[%c2_58, %c0_59] : memref<7x3xf32, #tpu.memory_space<smem>>
    %80 = vector.broadcast %79 : f32 to vector<16x16xf32>
    %81 = arith.mulf %80, %9 : vector<16x16xf32>
    %c2_60 = arith.constant 2 : index
    %c1_61 = arith.constant 1 : index
    %82 = memref.load %arg8[%c2_60, %c1_61] : memref<7x3xf32, #tpu.memory_space<smem>>
    %83 = vector.broadcast %82 : f32 to vector<16x16xf32>
    %84 = arith.mulf %83, %12 : vector<16x16xf32>
    %85 = arith.addf %81, %84 : vector<16x16xf32>
    %c2_62 = arith.constant 2 : index
    %c2_63 = arith.constant 2 : index
    %86 = memref.load %arg8[%c2_62, %c2_63] : memref<7x3xf32, #tpu.memory_space<smem>>
    %87 = vector.broadcast %86 : f32 to vector<16x16xf32>
    %88 = arith.mulf %87, %15 : vector<16x16xf32>
    %89 = arith.addf %85, %88 : vector<16x16xf32>
    %c2_64 = arith.constant 2 : index
    %90 = memref.load %arg9[%c2_64] : memref<7xf32, #tpu.memory_space<smem>>
    %91 = vector.broadcast %90 : f32 to vector<16x16xf32>
    %92 = arith.addf %89, %91 : vector<16x16xf32>
    %cst_65 = arith.constant 0.000000e+00 : f32
    %93 = vector.broadcast %cst_65 : f32 to vector<16x16xf32>
    %94 = arith.maximumf %92, %93 : vector<16x16xf32>
    %c0_66 = arith.constant 0 : index
    %c2_67 = arith.constant 2 : index
    %c0_68 = arith.constant 0 : index
    %c0_69 = arith.constant 0 : index
    %95 = vector.load %arg10[%c0_66, %c2_67, %c0_68, %c0_69] : memref<1x7x16x16xf32, #tpu.memory_space<vmem>>, vector<1x1x16x16xf32>
    %96 = vector.shape_cast %95 : vector<1x1x16x16xf32> to vector<16x16xf32>
    %97 = vector.shape_cast %94 : vector<16x16xf32> to vector<1x1x16x16xf32>
    tpu.vector_store %arg10[%c0_66, %c2_67, %c0_68, %c0_69], %97 {strides = array<i32>} : memref<1x7x16x16xf32, #tpu.memory_space<vmem>>, vector<1x1x16x16xf32>,
    %c3 = arith.constant 3 : index
    %c0_70 = arith.constant 0 : index
    %98 = memref.load %arg8[%c3, %c0_70] : memref<7x3xf32, #tpu.memory_space<smem>>
    %99 = vector.broadcast %98 : f32 to vector<16x16xf32>
    %100 = arith.mulf %99, %9 : vector<16x16xf32>
    %c3_71 = arith.constant 3 : index
    %c1_72 = arith.constant 1 : index
    %101 = memref.load %arg8[%c3_71, %c1_72] : memref<7x3xf32, #tpu.memory_space<smem>>
    %102 = vector.broadcast %101 : f32 to vector<16x16xf32>
    %103 = arith.mulf %102, %12 : vector<16x16xf32>
    %104 = arith.addf %100, %103 : vector<16x16xf32>
    %c3_73 = arith.constant 3 : index
    %c2_74 = arith.constant 2 : index
    %105 = memref.load %arg8[%c3_73, %c2_74] : memref<7x3xf32, #tpu.memory_space<smem>>
    %106 = vector.broadcast %105 : f32 to vector<16x16xf32>
    %107 = arith.mulf %106, %15 : vector<16x16xf32>
    %108 = arith.addf %104, %107 : vector<16x16xf32>
    %c3_75 = arith.constant 3 : index
    %109 = memref.load %arg9[%c3_75] : memref<7xf32, #tpu.memory_space<smem>>
    %110 = vector.broadcast %109 : f32 to vector<16x16xf32>
    %111 = arith.addf %108, %110 : vector<16x16xf32>
    %cst_76 = arith.constant 0.000000e+00 : f32
    %112 = vector.broadcast %cst_76 : f32 to vector<16x16xf32>
    %113 = arith.maximumf %111, %112 : vector<16x16xf32>
    %c0_77 = arith.constant 0 : index
    %c3_78 = arith.constant 3 : index
    %c0_79 = arith.constant 0 : index
    %c0_80 = arith.constant 0 : index
    %114 = vector.load %arg10[%c0_77, %c3_78, %c0_79, %c0_80] : memref<1x7x16x16xf32, #tpu.memory_space<vmem>>, vector<1x1x16x16xf32>
    %115 = vector.shape_cast %114 : vector<1x1x16x16xf32> to vector<16x16xf32>
    %116 = vector.shape_cast %113 : vector<16x16xf32> to vector<1x1x16x16xf32>
    tpu.vector_store %arg10[%c0_77, %c3_78, %c0_79, %c0_80], %116 {strides = array<i32>} : memref<1x7x16x16xf32, #tpu.memory_space<vmem>>, vector<1x1x16x16xf32>,
    %c4 = arith.constant 4 : index
    %c0_81 = arith.constant 0 : index
    %117 = memref.load %arg8[%c4, %c0_81] : memref<7x3xf32, #tpu.memory_space<smem>>
    %118 = vector.broadcast %117 : f32 to vector<16x16xf32>
    %119 = arith.mulf %118, %9 : vector<16x16xf32>
    %c4_82 = arith.constant 4 : index
    %c1_83 = arith.constant 1 : index
    %120 = memref.load %arg8[%c4_82, %c1_83] : memref<7x3xf32, #tpu.memory_space<smem>>
    %121 = vector.broadcast %120 : f32 to vector<16x16xf32>
    %122 = arith.mulf %121, %12 : vector<16x16xf32>
    %123 = arith.addf %119, %122 : vector<16x16xf32>
    %c4_84 = arith.constant 4 : index
    %c2_85 = arith.constant 2 : index
    %124 = memref.load %arg8[%c4_84, %c2_85] : memref<7x3xf32, #tpu.memory_space<smem>>
    %125 = vector.broadcast %124 : f32 to vector<16x16xf32>
    %126 = arith.mulf %125, %15 : vector<16x16xf32>
    %127 = arith.addf %123, %126 : vector<16x16xf32>
    %c4_86 = arith.constant 4 : index
    %128 = memref.load %arg9[%c4_86] : memref<7xf32, #tpu.memory_space<smem>>
    %129 = vector.broadcast %128 : f32 to vector<16x16xf32>
    %130 = arith.addf %127, %129 : vector<16x16xf32>
    %cst_87 = arith.constant 0.000000e+00 : f32
    %131 = vector.broadcast %cst_87 : f32 to vector<16x16xf32>
    %132 = arith.maximumf %130, %131 : vector<16x16xf32>
    %c0_88 = arith.constant 0 : index
    %c4_89 = arith.constant 4 : index
    %c0_90 = arith.constant 0 : index
    %c0_91 = arith.constant 0 : index
    %133 = vector.load %arg10[%c0_88, %c4_89, %c0_90, %c0_91] : memref<1x7x16x16xf32, #tpu.memory_space<vmem>>, vector<1x1x16x16xf32>
    %134 = vector.shape_cast %133 : vector<1x1x16x16xf32> to vector<16x16xf32>
    %135 = vector.shape_cast %132 : vector<16x16xf32> to vector<1x1x16x16xf32>
    tpu.vector_store %arg10[%c0_88, %c4_89, %c0_90, %c0_91], %135 {strides = array<i32>} : memref<1x7x16x16xf32, #tpu.memory_space<vmem>>, vector<1x1x16x16xf32>,
    %c5 = arith.constant 5 : index
    %c0_92 = arith.constant 0 : index
    %136 = memref.load %arg8[%c5, %c0_92] : memref<7x3xf32, #tpu.memory_space<smem>>
    %137 = vector.broadcast %136 : f32 to vector<16x16xf32>
    %138 = arith.mulf %137, %9 : vector<16x16xf32>
    %c5_93 = arith.constant 5 : index
    %c1_94 = arith.constant 1 : index
    %139 = memref.load %arg8[%c5_93, %c1_94] : memref<7x3xf32, #tpu.memory_space<smem>>
    %140 = vector.broadcast %139 : f32 to vector<16x16xf32>
    %141 = arith.mulf %140, %12 : vector<16x16xf32>
    %142 = arith.addf %138, %141 : vector<16x16xf32>
    %c5_95 = arith.constant 5 : index
    %c2_96 = arith.constant 2 : index
    %143 = memref.load %arg8[%c5_95, %c2_96] : memref<7x3xf32, #tpu.memory_space<smem>>
    %144 = vector.broadcast %143 : f32 to vector<16x16xf32>
    %145 = arith.mulf %144, %15 : vector<16x16xf32>
    %146 = arith.addf %142, %145 : vector<16x16xf32>
    %c5_97 = arith.constant 5 : index
    %147 = memref.load %arg9[%c5_97] : memref<7xf32, #tpu.memory_space<smem>>
    %148 = vector.broadcast %147 : f32 to vector<16x16xf32>
    %149 = arith.addf %146, %148 : vector<16x16xf32>
    %cst_98 = arith.constant 0.000000e+00 : f32
    %150 = vector.broadcast %cst_98 : f32 to vector<16x16xf32>
    %151 = arith.maximumf %149, %150 : vector<16x16xf32>
    %c0_99 = arith.constant 0 : index
    %c5_100 = arith.constant 5 : index
    %c0_101 = arith.constant 0 : index
    %c0_102 = arith.constant 0 : index
    %152 = vector.load %arg10[%c0_99, %c5_100, %c0_101, %c0_102] : memref<1x7x16x16xf32, #tpu.memory_space<vmem>>, vector<1x1x16x16xf32>
    %153 = vector.shape_cast %152 : vector<1x1x16x16xf32> to vector<16x16xf32>
    %154 = vector.shape_cast %151 : vector<16x16xf32> to vector<1x1x16x16xf32>
    tpu.vector_store %arg10[%c0_99, %c5_100, %c0_101, %c0_102], %154 {strides = array<i32>} : memref<1x7x16x16xf32, #tpu.memory_space<vmem>>, vector<1x1x16x16xf32>,
    %c6 = arith.constant 6 : index
    %c0_103 = arith.constant 0 : index
    %155 = memref.load %arg8[%c6, %c0_103] : memref<7x3xf32, #tpu.memory_space<smem>>
    %156 = vector.broadcast %155 : f32 to vector<16x16xf32>
    %157 = arith.mulf %156, %9 : vector<16x16xf32>
    %c6_104 = arith.constant 6 : index
    %c1_105 = arith.constant 1 : index
    %158 = memref.load %arg8[%c6_104, %c1_105] : memref<7x3xf32, #tpu.memory_space<smem>>
    %159 = vector.broadcast %158 : f32 to vector<16x16xf32>
    %160 = arith.mulf %159, %12 : vector<16x16xf32>
    %161 = arith.addf %157, %160 : vector<16x16xf32>
    %c6_106 = arith.constant 6 : index
    %c2_107 = arith.constant 2 : index
    %162 = memref.load %arg8[%c6_106, %c2_107] : memref<7x3xf32, #tpu.memory_space<smem>>
    %163 = vector.broadcast %162 : f32 to vector<16x16xf32>
    %164 = arith.mulf %163, %15 : vector<16x16xf32>
    %165 = arith.addf %161, %164 : vector<16x16xf32>
    %c6_108 = arith.constant 6 : index
    %166 = memref.load %arg9[%c6_108] : memref<7xf32, #tpu.memory_space<smem>>
    %167 = vector.broadcast %166 : f32 to vector<16x16xf32>
    %168 = arith.addf %165, %167 : vector<16x16xf32>
    %cst_109 = arith.constant 0.000000e+00 : f32
    %169 = vector.broadcast %cst_109 : f32 to vector<16x16xf32>
    %170 = arith.maximumf %168, %169 : vector<16x16xf32>
    %c0_110 = arith.constant 0 : index
    %c6_111 = arith.constant 6 : index
    %c0_112 = arith.constant 0 : index
    %c0_113 = arith.constant 0 : index
    %171 = vector.load %arg10[%c0_110, %c6_111, %c0_112, %c0_113] : memref<1x7x16x16xf32, #tpu.memory_space<vmem>>, vector<1x1x16x16xf32>
    %172 = vector.shape_cast %171 : vector<1x1x16x16xf32> to vector<16x16xf32>
    %173 = vector.shape_cast %170 : vector<16x16xf32> to vector<1x1x16x16xf32>
    tpu.vector_store %arg10[%c0_110, %c6_111, %c0_112, %c0_113], %173 {strides = array<i32>} : memref<1x7x16x16xf32, #tpu.memory_space<vmem>>, vector<1x1x16x16xf32>,
    %174 = arith.mulf %1, %56 : vector<16x16xf32>
    %cst_114 = arith.constant dense<0.000000e+00> : vector<8x16xf32>
    %175 = tpu.matmul %5, %174, %cst_114 {dimension_numbers = #tpu.dot_dimension_numbers<[1], [0], [0], [1], [0, 0, 1, 1], [], []>} : vector<8x16xf32>, vector<16x16xf32>, vector<8x16xf32> -> vector<8x16xf32>
    %cst_115 = arith.constant dense<0.000000e+00> : vector<8x8xf32>
    %176 = tpu.matmul %175, %6, %cst_115 {dimension_numbers = #tpu.dot_dimension_numbers<[1], [0], [0], [1], [0, 0, 1, 1], [], []>} : vector<8x16xf32>, vector<16x8xf32>, vector<8x8xf32> -> vector<8x8xf32>
    %c0_116 = arith.constant 0 : index
    %c0_117 = arith.constant 0 : index
    %c0_118 = arith.constant 0 : index
    %177 = vector.load %arg12[%c0_116, %c0_117, %c0_118] : memref<1x8x8xf32, #tpu.memory_space<vmem>>, vector<1x8x8xf32>
    %178 = vector.shape_cast %177 : vector<1x8x8xf32> to vector<8x8xf32>
    %179 = vector.shape_cast %176 : vector<8x8xf32> to vector<1x8x8xf32>
    tpu.vector_store %arg12[%c0_116, %c0_117, %c0_118], %179 {strides = array<i32>} : memref<1x8x8xf32, #tpu.memory_space<vmem>>, vector<1x8x8xf32>,
    return
  }
  func.func @transform_0(%arg0: i32) -> (i32, i32, i32, i32) {
    %c0_i32 = arith.constant 0 : i32
    %c0_i32_0 = arith.constant 0 : i32
    %c0_i32_1 = arith.constant 0 : i32
    %c0_i32_2 = arith.constant 0 : i32
    return %arg0, %c0_i32, %c0_i32_0, %c0_i32_1 : i32, i32, i32, i32
  }
  func.func @transform_1(%arg0: i32) -> (i32, i32, i32, i32) {
    %c0_i32 = arith.constant 0 : i32
    %c0_i32_0 = arith.constant 0 : i32
    %c0_i32_1 = arith.constant 0 : i32
    %c0_i32_2 = arith.constant 0 : i32
    return %arg0, %c0_i32, %c0_i32_0, %c0_i32_1 : i32, i32, i32, i32
  }
  func.func @transform_2(%arg0: i32) -> (i32, i32) {
    %c0_i32 = arith.constant 0 : i32
    %c0_i32_0 = arith.constant 0 : i32
    %c0_i32_1 = arith.constant 0 : i32
    return %c0_i32, %c0_i32_0 : i32, i32
  }
  func.func @transform_3(%arg0: i32) -> (i32, i32) {
    %c0_i32 = arith.constant 0 : i32
    %c0_i32_0 = arith.constant 0 : i32
    %c0_i32_1 = arith.constant 0 : i32
    return %c0_i32, %c0_i32_0 : i32, i32
  }
  func.func @transform_4(%arg0: i32) -> (i32, i32) {
    %c0_i32 = arith.constant 0 : i32
    %c0_i32_0 = arith.constant 0 : i32
    %c0_i32_1 = arith.constant 0 : i32
    return %c0_i32, %c0_i32_0 : i32, i32
  }
  func.func @transform_5(%arg0: i32) -> (i32, i32) {
    %c0_i32 = arith.constant 0 : i32
    %c0_i32_0 = arith.constant 0 : i32
    %c0_i32_1 = arith.constant 0 : i32
    return %c0_i32, %c0_i32_0 : i32, i32
  }
  func.func @transform_6(%arg0: i32) -> (i32, i32) {
    %c0_i32 = arith.constant 0 : i32
    %c0_i32_0 = arith.constant 0 : i32
    %c0_i32_1 = arith.constant 0 : i32
    return %c0_i32, %c0_i32_0 : i32, i32
  }
  func.func @transform_7(%arg0: i32) -> (i32, i32) {
    %c0_i32 = arith.constant 0 : i32
    %c0_i32_0 = arith.constant 0 : i32
    %c0_i32_1 = arith.constant 0 : i32
    return %c0_i32, %c0_i32_0 : i32, i32
  }
  func.func @transform_8(%arg0: i32) -> i32 {
    %c0_i32 = arith.constant 0 : i32
    %c0_i32_0 = arith.constant 0 : i32
    return %c0_i32 : i32
  }
  func.func @transform_9(%arg0: i32) -> (i32, i32, i32, i32) {
    %c0_i32 = arith.constant 0 : i32
    %c0_i32_0 = arith.constant 0 : i32
    %c0_i32_1 = arith.constant 0 : i32
    %c0_i32_2 = arith.constant 0 : i32
    return %arg0, %c0_i32, %c0_i32_0, %c0_i32_1 : i32, i32, i32, i32
  }
  func.func @transform_10(%arg0: i32) -> (i32, i32, i32) {
    %c0_i32 = arith.constant 0 : i32
    %c0_i32_0 = arith.constant 0 : i32
    %c0_i32_1 = arith.constant 0 : i32
    return %arg0, %c0_i32, %c0_i32_0 : i32, i32, i32
  }
  func.func @transform_11(%arg0: i32) -> (i32, i32, i32) {
    %c0_i32 = arith.constant 0 : i32
    %c0_i32_0 = arith.constant 0 : i32
    %c0_i32_1 = arith.constant 0 : i32
    return %arg0, %c0_i32, %c0_i32_0 : i32, i32, i32
  }
  func.func @transform_12(%arg0: i32) -> (i32, i32, i32) {
    %c0_i32 = arith.constant 0 : i32
    %c0_i32_0 = arith.constant 0 : i32
    %c0_i32_1 = arith.constant 0 : i32
    return %arg0, %c0_i32, %c0_i32_0 : i32, i32, i32
  }
}

</mosaic_0001>

<bundles_post_ra>
// kernel: tpu_custom_call.1
= control target key start
LH: loop header
LB: loop body
LE: loop exit
PB: predicated region body
PF: predicated region fallthrough
CT: control target
= control target key end

     0   :  { %s3279_s0 = inlined_call_operand.hbm [shape: f32[2,1,16,16], index: 0, kind: input, shape index: {}]   ;;  %s3280_s1 = inlined_call_operand.hbm [shape: f32[2,3,16,16], index: 1, kind: input, shape index: {}]   ;;  %s3281_s2 = inlined_call_operand.hbm [shape: f32[16,16], index: 2, kind: input, shape index: {}]   ;;  %s3282_s3 = inlined_call_operand.hbm [shape: f32[16,8], index: 3, kind: input, shape index: {}]   ;;  %s3283_s4 = inlined_call_operand.hbm [shape: f32[16,8], index: 4, kind: input, shape index: {}]   ;;  %s3284_s5 = inlined_call_operand.hbm [shape: f32[8,16], index: 5, kind: input, shape index: {}]   ;;  %s3285_s6 = inlined_call_operand.hbm [shape: f32[16,8], index: 6, kind: input, shape index: {}]   ;;  %s3286_s7 = inlined_call_operand.hbm [shape: f32[7,3], index: 7, kind: input, shape index: {}]   ;;  %s3287_s8 = inlined_call_operand.hbm [shape: f32[7], index: 8, kind: input, shape index: {}]   ;;  %s3288_s9 = inlined_call_operand.hbm [shape: f32[2,7,16,16], index: 9, kind: output, shape index: {0}]   ;;  %s3289_s10 = inlined_call_operand.hbm [shape: f32[2,24,8], index: 10, kind: output, shape index: {1}]   ;;  %s3290_s11 = inlined_call_operand.hbm [shape: f32[2,8,8], index: 11, kind: output, shape index: {2}]   ;;  %s3291_s12 = inlined_call_operand.hbm [shape: f32[2,1,1], index: 12, kind: output, shape index: {3}]  }
   0x1   :  { %3304 = sst [smem:[#allocation34_spill]] %s3279_s0 }
   0x2   :  { %3305 = sst [smem:[#allocation35_spill]] %s3281_s2 }
   0x3   :  { %3306 = sst [smem:[#allocation36_spill]] %s3282_s3 }
   0x4   :  { %3307 = sst [smem:[#allocation37_spill]] %s3283_s4 }
   0x5   :  { %3308 = sst [smem:[#allocation38_spill]] %s3284_s5 }
   0x6   :  { %3309 = sst [smem:[#allocation39_spill]] %s3285_s6 }
   0x7   :  { %3310 = sst [smem:[#allocation40_spill]] %s3288_s9 }
   0x8   :  { %3311 = sst [smem:[#allocation41_spill]] %s3289_s10 }
   0x9   :  { %3312 = sst [smem:[#allocation42_spill]] %s3290_s11 }
   0xa   :  { %3313 = sst [smem:[#allocation43_spill]] %s3291_s12 }
   0xb   :  { %18 = vsyncpa [#allocation3], 0 }
   0xc   :  { %20 = vsyncpa [#allocation3 + $0x1], 0 }
   0xd   :  { %21 = vsyncpa [#allocation7], 0 }
   0xe   :  { %23 = vsyncpa [#allocation7 + $0x1], 0 }
   0xf   :  { %24 = vsyncpa [#allocation10], 0 }
  0x10   :  { %25 = vsyncpa [#allocation13], 0 }
  0x11   :  { %26 = vsyncpa [#allocation5], 0 }
  0x12   :  { %27 = vsyncpa [#allocation17], 0 }
  0x13   :  { %28 = vsyncpa [#allocation4], 0 }
  0x14   :  { %30 = vsyncpa [#allocation4 + $0x1], 0 }
  0x15   :  { %31 = vsyncpa [#allocation20], 0 }
  0x16   :  { %33 = vsyncpa [#allocation20 + $0x1], 0 }
  0x17   :  { %34 = vsyncpa [#allocation23], 0 }
  0x18   :  { %36 = vsyncpa [#allocation23 + $0x1], 0  ;;  %s2553_s21 = smov 0   ;;  %s2555_s22 = smov 0  }
  0x19   :  { %s2557_s23 = smov 0   ;;  %s2559_s24 = smov 0  }
  0x1a LB: > { %s2468_s25 = smov [#allocation8]   ;;  %s2574_s27 = sadd.s32 4294967295, %s2466_s24   ;;  %s2466_s24 = sphi %s2559_s24, %s3353_s24   ;;  %s2462_s23 = sphi %s2557_s23, %s3352_s23   ;;  %s2458_s22 = sphi %s2555_s22, %s3351_s22   ;;  %s2454_s21 = sphi %s2553_s21, %s3350_s21  }
  0x1b   : > { %s362_s26 = sshll.u32 %s2468_s25, 4  ;;  %p1705_p0 = scmp.ge.s32.totalorder %s2466_s24, 1  ;;  %s2579_s26 = int_to_ptr.vmem [resolvable:$true] %s362_s26 }
  0x1c   : > { %p3298_p1 = scmp.eq.s32.totalorder %s2574_s27, 0  ;;  %p350_p2 = scmp.lt.s32.totalorder %s2466_s24, 3 }
  0x1d   : > { %s2469_s29 = smov [#allocation9]   ;;  %s2470_s14 = smov [#allocation12]  }
  0x1e   : > { %p2581_p3 = pnand %p1705_p0, %p350_p2  ;;  %s375_s30 = sshll.u32 %s2469_s29, 4  ;;  %s2594_s30 = int_to_ptr.vmem [resolvable:$true] %s375_s30 }
  0x1f   : > { %s402_s15 = sshll.u32 %s2470_s14, 4  ;;  %s3316_s2 = sld [smem:[#allocation35_spill]]  ;;  %s2596_s15 = int_to_ptr.vmem [resolvable:$true] %s402_s15 }
  0x20   : > { %s3314_s28 = scalar_select %p2581_p3, 1, 0 }
  0x21   : > { %p1954_p5 = pneg %p2581_p3 }
  0x23   : > { %p2590_p6 = pnand %p1954_p5, %p3298_p1 }
  0x25   : > { %s2058_s18 = scalar_lea.hbm %s3316_s2, 256  ;;  %p2606_p8 = pneg %p2590_p6 }
  0x26   : > { %p2059_p7 = scmp.ne.s32.totalorder %s3316_s2, %s2058_s18  ;;  %p2065_p11 = scmp.lt.u32.totalorder %s2058_s18, %s3316_s2 }
  0x28   : > { %p2061_p9 = pnand %p2606_p8, %p2059_p7 }
  0x2a   : > { %p2062_p10 = pneg %p2061_p9 }
  0x2c   : > { %p2067_p12 = pnand %p2065_p11, %p2062_p10 }
  0x2e   : > { %2070 = shalt.err (!%p2067_p12)
}
  0x2f   : > { %s2071_s16 = scalar_lea.vmem %s2579_s26, 256  ;;  %p2079_p5 = scmp.lt.s32.totalorder %s2579_s26, %s2579_s26 }
  0x30   : > { %p2072_p13 = scmp.ne.s32.totalorder %s2579_s26, %s2071_s16  ;;  %p2080_p4 = scmp.lt.s32.totalorder %s2071_s16, %s2071_s16 }
  0x32   : > { %p2074_p0 = pnand %p2072_p13, %p2606_p8  ;;  %p2081_p7 = por %p2080_p4, %p2079_p5 }
  0x34   : > { %p2075_p2 = pneg %p2074_p0 }
  0x36   : > { %p2082_p9 = pnand %p2081_p7, %p2075_p2 }
  0x38   : > { %2085 = shalt.err (!%p2082_p9)
}
  0x39   : > { %s3296_s17 = smov 128   ;;  %s3301_s18 = smov 8  }
  0x3a   : > { %1957 = dma.hbm_to_vmem [thread:$0]  (!%p2590_p6), %s3316_s2, 256, %s2579_s26, [#allocation7], %s3296_s17, %s3296_s17, %s3301_s18  }
  0x3b   : > { %s3318_s3 = sld [smem:[#allocation36_spill]] }
  0x41   : > { %s2086_s16 = scalar_lea.hbm %s3318_s3, 256 }
  0x42   : > { %p2087_p4 = scmp.ne.s32.totalorder %s3318_s3, %s2086_s16  ;;  %p2093_p12 = scmp.lt.u32.totalorder %s2086_s16, %s3318_s3 }
  0x44   : > { %p2089_p10 = pnand %p2087_p4, %p2606_p8 }
  0x46   : > { %p2090_p11 = pneg %p2089_p10 }
  0x48   : > { %p2095_p13 = pnand %p2093_p12, %p2090_p11 }
  0x4a   : > { %2098 = shalt.err (!%p2095_p13)
}
  0x4b   : > { %s2099_s26 = scalar_lea.vmem %s2594_s30, 256  ;;  %p2107_p7 = scmp.lt.s32.totalorder %s2594_s30, %s2594_s30 }
  0x4c   : > { %p2100_p0 = scmp.ne.s32.totalorder %s2594_s30, %s2099_s26  ;;  %p2108_p9 = scmp.lt.s32.totalorder %s2099_s26, %s2099_s26 }
  0x4e   : > { %p2102_p2 = pnand %p2100_p0, %p2606_p8  ;;  %p2109_p4 = por %p2108_p9, %p2107_p7 }
  0x50   : > { %p2103_p5 = pneg %p2102_p2 }
  0x52   : > { %p2110_p10 = pnand %p2109_p4, %p2103_p5 }
  0x54   : > { %2113 = shalt.err (!%p2110_p10)
}
  0x55   : > { %1960 = dma.hbm_to_vmem [thread:$0]  (!%p2590_p6), %s3318_s3, 256, %s2594_s30, [#allocation10], %s3296_s17, %s3296_s17, %s3301_s18  }
  0x56   : > { %s3319_s5 = sld [smem:[#allocation38_spill]] }
  0x5c   : > { %s2114_s19 = scalar_lea.hbm %s3319_s5, 128 }
  0x5d   : > { %p2115_p11 = scmp.ne.s32.totalorder %s3319_s5, %s2114_s19  ;;  %p2121_p0 = scmp.lt.u32.totalorder %s2114_s19, %s3319_s5 }
  0x5f   : > { %p2117_p12 = pnand %p2115_p11, %p2606_p8 }
  0x61   : > { %p2118_p13 = pneg %p2117_p12 }
  0x63   : > { %p2123_p2 = pnand %p2121_p0, %p2118_p13 }
  0x65   : > { %2126 = shalt.err (!%p2123_p2)
}
  0x66   : > { %s2127_s30 = scalar_lea.vmem %s2596_s15, 128  ;;  %p2135_p4 = scmp.lt.s32.totalorder %s2596_s15, %s2596_s15 }
  0x67   : > { %p2128_p5 = scmp.ne.s32.totalorder %s2596_s15, %s2127_s30  ;;  %p2136_p10 = scmp.lt.s32.totalorder %s2127_s30, %s2127_s30 }
  0x69   : > { %p2130_p7 = pnand %p2128_p5, %p2606_p8  ;;  %p2137_p11 = por %p2136_p10, %p2135_p4 }
  0x6b   : > { %p2131_p9 = pneg %p2130_p7 }
  0x6d   : > { %p2138_p12 = pnand %p2137_p11, %p2131_p9 }
  0x6f   : > { %2141 = shalt.err (!%p2138_p12)
}
  0x70   : > { %1966 = dma.hbm_to_vmem [thread:$0]  (!%p2590_p6), %s3319_s5, 128, %s2596_s15, [#allocation13]  }
  0x71   : > { %s2473_s10 = smov [#allocation11]   ;;  %s2474_s12 = smov [#allocation14]  }
  0x72   : > { %s388_s11 = sshll.u32 %s2473_s10, 4  ;;  %s412_s19 = sshll.u32 %s2474_s12, 4  ;;  %s389_s11 = int_to_ptr.vmem [resolvable:$true] %s388_s11  ;;  %s413_s19 = int_to_ptr.vmem [resolvable:$true] %s412_s19 }
  0x73   : > { %s3320_s4 = sld [smem:[#allocation37_spill]] }
  0x79   : > { %s2142_s14 = scalar_lea.hbm %s3320_s4, 256 }
  0x7a   : > { %p2143_p13 = scmp.ne.s32.totalorder %s3320_s4, %s2142_s14  ;;  %p2149_p5 = scmp.lt.u32.totalorder %s2142_s14, %s3320_s4 }
  0x7c   : > { %p2145_p0 = pnand %p2143_p13, %p2606_p8 }
  0x7e   : > { %p2146_p2 = pneg %p2145_p0 }
  0x80   : > { %p2151_p7 = pnand %p2149_p5, %p2146_p2 }
  0x82   : > { %2154 = shalt.err (!%p2151_p7)
}
  0x83   : > { %s2155_s15 = scalar_lea.vmem %s389_s11, 256  ;;  %p2163_p11 = scmp.lt.s32.totalorder %s389_s11, %s389_s11 }
  0x84   : > { %p2156_p9 = scmp.ne.s32.totalorder %s389_s11, %s2155_s15  ;;  %p2164_p12 = scmp.lt.s32.totalorder %s2155_s15, %s2155_s15 }
  0x86   : > { %p2158_p4 = pnand %p2156_p9, %p2606_p8  ;;  %p2165_p1 = por %p2164_p12, %p2163_p11 }
  0x88   : > { %p2159_p10 = pneg %p2158_p4 }
  0x8a   : > { %p2166_p3 = pnand %p2165_p1, %p2159_p10 }
  0x8c   : > { %2169 = shalt.err (!%p2166_p3)
}
  0x8d   : > { %s3321_s9 = smov 128   ;;  %s3322_s6 = sld [smem:[#allocation39_spill]] }
  0x8e   : > { %1963 = dma.hbm_to_vmem [thread:$0]  (!%p2590_p6), %s3320_s4, 256, %s389_s11, [#allocation10], %s3321_s9, %s3321_s9, %s3301_s18  }
  0x93   : > { %s2170_s29 = scalar_lea.hbm %s3322_s6, 256 }
  0x94   : > { %p2171_p1 = scmp.ne.s32.totalorder %s3322_s6, %s2170_s29  ;;  %p2177_p0 = scmp.lt.u32.totalorder %s2170_s29, %s3322_s6 }
  0x96   : > { %p2173_p3 = pnand %p2171_p1, %p2606_p8 }
  0x98   : > { %p2174_p13 = pneg %p2173_p3 }
  0x9a   : > { %p2179_p2 = pnand %p2177_p0, %p2174_p13 }
  0x9c   : > { %2182 = shalt.err (!%p2179_p2)
}
  0x9d   : > { %s2183_s15 = scalar_lea.vmem %s413_s19, 256  ;;  %p2191_p4 = scmp.lt.s32.totalorder %s413_s19, %s413_s19 }
  0x9e   : > { %p2184_p5 = scmp.ne.s32.totalorder %s413_s19, %s2183_s15  ;;  %p2192_p10 = scmp.lt.s32.totalorder %s2183_s15, %s2183_s15 }
  0xa0   : > { %p2186_p7 = pnand %p2184_p5, %p2606_p8  ;;  %p2193_p11 = por %p2192_p10, %p2191_p4 }
  0xa2   : > { %p2187_p9 = pneg %p2186_p7 }
  0xa4   : > { %p2194_p12 = pnand %p2193_p11, %p2187_p9 }
  0xa6   : > { %2197 = shalt.err (!%p2194_p12)
}
  0xa7   : > { %1969 = dma.hbm_to_vmem [thread:$0]  (!%p2590_p6), %s3322_s6, 256, %s413_s19, [#allocation13], %s3321_s9, %s3321_s9, %s3301_s18  }
  0xa8   : > { %s2198_s20 = scalar_lea.hbm %s3286_s7, 128 }
  0xa9   : > { %p2199_p1 = scmp.ne.s32.totalorder %s3286_s7, %s2198_s20  ;;  %p2205_p0 = scmp.lt.u32.totalorder %s2198_s20, %s3286_s7 }
  0xab   : > { %p2201_p3 = pnand %p2199_p1, %p2606_p8 }
  0xad   : > { %p2202_p13 = pneg %p2201_p3 }
  0xaf   : > { %p2207_p2 = pnand %p2205_p0, %p2202_p13 }
  0xb1   : > { %2210 = shalt.err (!%p2207_p2)
}
  0xb2   : > { %s2475_s26 = smov [#allocation15]   ;;  %s2211_s10 = scalar_lea.hbm %s3287_s8, 16 }
  0xb3   : > { %1972 = dma.hbm_to_smem (!%p2590_p6), %s3286_s7, 128, %s2475_s26, [#allocation5]  }
  0xb4   : > { %p2212_p5 = scmp.ne.s32.totalorder %s3287_s8, %s2211_s10  ;;  %p2218_p4 = scmp.lt.u32.totalorder %s2211_s10, %s3287_s8 }
  0xb6   : > { %p2214_p7 = pnand %p2212_p5, %p2606_p8 }
  0xb8   : > { %p2215_p9 = pneg %p2214_p7 }
  0xba   : > { %p2220_p10 = pnand %p2218_p4, %p2215_p9 }
  0xbc   : > { %2223 = shalt.err (!%p2220_p10)
}
  0xbd   : > { %s2476_s16 = smov [#allocation16]   ;;  %s3300_s13 = sadd.s32 4294967294, %s2466_s24  }
  0xbe   : > { %1975 = dma.hbm_to_smem (!%p2590_p6), %s3287_s8, 16, %s2476_s16, [#allocation17]  }
  0xbf   : > { %s2755_s25 = sadd.s32 1, %s2466_s24   ;;  %s49_s19 = sadd.s32 1, %s2462_s23 }
  0xc0   : > { %s46_s15 = ssub.s32 %s2466_s24, %s2755_s25  ;;  %p56_p8 = scmp.ne.s32.totalorder %s2462_s23, %s2458_s22 }
  0xc1   : > { %p47_p11 = scmp.eq.s32.totalorder %s46_s15, 0  ;;  %p57_p12 = scmp.eq.s32.totalorder %s2466_s24, 0 }
  0xc2   : > { %p62_p1 = scmp.ne.s32.totalorder %s2458_s22, %s2454_s21  ;;  %p259_p3 = scmp.eq.s32.totalorder %s2574_s27, 1 }
  0xc3   : > { %s2767_s11 = scalar_select %p47_p11, %s2462_s23, %s49_s19  }
  0xc4   : > { %p58_p13 = por %p57_p12, %p56_p8  ;;  %p3323_p0 = scmp.eq.s32.totalorder %s2574_s27, 0 }
  0xc5   : > { %p2775_p6 = por %p259_p3, %p56_p8  ;;  %p265_p5 = scmp.eq.s32.totalorder %s3300_s13, 1 }
  0xc6   : > { %p2771_p2 = por %p3323_p0, %p62_p1  ;;  %p2003_p7 = scmp.lt.s32.totalorder %s2466_s24, 2 }
  0xc7   : > { %s3325_s10 = scalar_select %p2775_p6, 1, 0 }
  0xc8   : > { %s2783_s12 = sand.u32 1, %s2462_s23   ;;  %p2785_p9 = por %p265_p5, %p62_p1 }
  0xc9   : > { %s1714_s20 = sshll.u32 %s2783_s12, 4  ;;  %s1791_s14 = sshll.u32 %s2466_s24, 8 }
  0xca   : > { %s3326_s29 = scalar_select %p2785_p9, 1, 0 }
  0xcb   : > { %s3327_s0 = sld [smem:[#allocation34_spill]]  ;;  %s448_s19 = scalar_lea.vmem [#allocation2], %s1714_s20 }
  0xcc   : > { %s455_s15 = sshll.u32 %s448_s19, 4  ;;  %p2796_p4 = pnand %p2003_p7, %p58_p13  ;;  %s2800_s15 = int_to_ptr.vmem [resolvable:$true] %s455_s15 }
  0xcd   : > { %s445_s2 = scalar_lea.sflag [#allocation3], %s2783_s12 }
  0xce   : > { %p2226_p8 = pneg %p2796_p4 }
  0xd1   : > { %s2794_s26 = scalar_lea.hbm %s3327_s0, %s1791_s14  ;;  %s2229_s16 = scalar_lea.hbm %s3327_s0, 512 }
  0xd2   : > { %s2224_s3 = scalar_lea.hbm %s2794_s26, 256  ;;  %p2230_p1 = scmp.lt.u32.totalorder %s2794_s26, %s3327_s0 }
  0xd3   : > { %p2225_p10 = scmp.ne.s32.totalorder %s2794_s26, %s2224_s3  ;;  %p2231_p3 = scmp.lt.u32.totalorder %s2229_s16, %s2224_s3 }
  0xd4   : > { %p2233_p0 = scmp.lt.u32.totalorder %s2224_s3, %s2794_s26 }
  0xd5   : > { %p2227_p11 = pnand %p2226_p8, %p2225_p10  ;;  %p2232_p13 = por %p2231_p3, %p2230_p1 }
  0xd7   : > { %p2228_p12 = pneg %p2227_p11  ;;  %p2234_p5 = por %p2233_p0, %p2232_p13 }
  0xd9   : > { %p2235_p7 = pnand %p2234_p5, %p2228_p12 }
  0xdb   : > { %2238 = shalt.err (!%p2235_p7)
}
  0xdc   : > { %s2239_s18 = scalar_lea.vmem %s2800_s15, 256  ;;  %s2477_s20 = smov [#allocation2]  }
  0xdd   : > { %p2240_p10 = scmp.ne.s32.totalorder %s2800_s15, %s2239_s18  ;;  %s2244_s14 = sshll.u32 %s2477_s20, 4  ;;  %s2245_s14 = int_to_ptr.vmem [resolvable:$false] %s2244_s14 }
  0xde   : > { %s2246_s30 = scalar_lea.vmem %s2245_s14, 512  ;;  %p2247_p6 = scmp.lt.s32.totalorder %s2800_s15, %s2245_s14 }
  0xdf   : > { %p2242_p11 = pnand %p2240_p10, %p2226_p8  ;;  %p2248_p1 = scmp.lt.s32.totalorder %s2246_s30, %s2239_s18 }
  0xe1   : > { %p2243_p9 = pneg %p2242_p11  ;;  %p2249_p3 = por %p2248_p1, %p2247_p6 }
  0xe3   : > { %p2250_p13 = pnand %p2249_p3, %p2243_p9 }
  0xe5   : > { %2253 = shalt.err (!%p2250_p13)
}
  0xe6   : > { %s3329_s3 = smov 8   ;;  %s1905_s16 = smul.u32 48, %s2783_s12 }
  0xe7   : > { %1979 = dma.hbm_to_vmem [thread:$0]  (!%p2796_p4), %s2794_s26, 256, %s2800_s15, %s445_s2, %s3321_s9, %s3321_s9, %s3329_s3  }
  0xe8   : > { %s1906_s19 = smul.u32 768, %s2466_s24  ;;  %s469_s30 = scalar_lea.vmem [#allocation6], %s1905_s16 }
  0xe9   : > { %s476_s0 = sshll.u32 %s469_s30, 4  ;;  %s3330_s4 = sand.u32 1, %s2466_s24   ;;  %s2841_s0 = int_to_ptr.vmem [resolvable:$true] %s476_s0 }
  0xea   : > { %s2839_s14 = scalar_lea.hbm %s3280_s1, %s1906_s19  ;;  %s2845_s5 = scalar_lea.sflag [#allocation7], %s3330_s4 }
  0xeb   : > { %s2254_s6 = scalar_lea.hbm %s2839_s14, 768  ;;  %s2259_s26 = scalar_lea.hbm %s3280_s1, 1536 }
  0xec   : > { %p2255_p6 = scmp.ne.s32.totalorder %s2839_s14, %s2254_s6  ;;  %p2260_p0 = scmp.lt.u32.totalorder %s2839_s14, %s3280_s1 }
  0xed   : > { %p2261_p5 = scmp.lt.u32.totalorder %s2259_s26, %s2254_s6  ;;  %p2263_p10 = scmp.lt.u32.totalorder %s2254_s6, %s2839_s14 }
  0xee   : > { %p2257_p9 = pnand %p2255_p6, %p2226_p8 }
  0xef   : > { %p2262_p7 = por %p2261_p5, %p2260_p0 }
  0xf0   : > { %p2258_p12 = pneg %p2257_p9 }
  0xf1   : > { %p2264_p11 = por %p2263_p10, %p2262_p7 }
  0xf3   : > { %p2265_p1 = pnand %p2264_p11, %p2258_p12 }
  0xf5   : > { %2268 = shalt.err (!%p2265_p1)
}
  0xf6   : > { %s2269_s4 = scalar_lea.vmem %s2841_s0, 768  ;;  %s2478_s16 = smov [#allocation6]  }
  0xf7   : > { %p2270_p3 = scmp.ne.s32.totalorder %s2841_s0, %s2269_s4  ;;  %s2274_s18 = sshll.u32 %s2478_s16, 4  ;;  %s2275_s18 = int_to_ptr.vmem [resolvable:$false] %s2274_s18 }
  0xf8   : > { %s2276_s20 = scalar_lea.vmem %s2275_s18, 1536  ;;  %p2277_p9 = scmp.lt.s32.totalorder %s2841_s0, %s2275_s18 }
  0xf9   : > { %p2272_p13 = pnand %p2270_p3, %p2226_p8  ;;  %p2278_p0 = scmp.lt.s32.totalorder %s2276_s20, %s2269_s4 }
  0xfb   : > { %p2273_p6 = pneg %p2272_p13  ;;  %p2279_p5 = por %p2278_p0, %p2277_p9 }
  0xfd   : > { %p2280_p7 = pnand %p2279_p5, %p2273_p6 }
  0xff   : > { %2283 = shalt.err (!%p2280_p7)
}
 0x100   : > { %1982 = dma.hbm_to_vmem [thread:$0]  (!%p2796_p4), %s2839_s14, 768, %s2841_s0, %s2845_s5, %s3321_s9, %s3321_s9, %s3329_s3  }
 0x101   : > { %p3331_p8 = scmp.ne.s32.totalorder %s3314_s28, 0 }
 0x102   : > { %s2877_s6 = sand.u32 (!%p3331_p8), 1, %s2458_s22  }
 0x103   : > { %488 = sbr.rel (%p3331_p8) target bundleno = 981 (0x3d5), region = 56  ;;  %s1719_s30 = sshll.u32 (!%p3331_p8), %s2877_s6, 4 }
 0x104   : > { %s491_s2 = scalar_lea.sflag (!%p3331_p8), [#allocation3], %s2877_s6  ;;  %s494_s12 = scalar_lea.vmem (!%p3331_p8), [#allocation2], %s1719_s30 }
 0x10a   : > { %2413 = dma.done.wait (%p2771_p2), %s491_s2, 256  }
 0x10b   : > { %2415 = vsyncadd (%p2771_p2), %s491_s2, 4294967040  ;;  %s499_s0 = sand.u32 1, %s2574_s27   ;;  %s1907_s5 = smul.u32 48, %s2877_s6 }
 0x10c   : > { %s500_s28 = scalar_lea.sflag [#allocation7], %s499_s0 }
 0x10d   : > { %s2889_s9 = scalar_lea.vmem [#allocation6], %s1907_s5 }
 0x10e   : > { %2417 = dma.done.wait (%p2771_p2), %s500_s28, 768  }
 0x10f   : > { %2419 = vsyncadd (%p2771_p2), %s500_s28, 4294966528  ;;  %p3332_p4 = scmp.eq.s32.totalorder %s2574_s27, 0 }
 0x111   : > { %2421 = dma.done.wait (%p3332_p4), [#allocation7], 256   ;;  %p3333_p12 = pmov %p3332_p4 }
 0x112   : > { %p3334_p10 = pmov %p3332_p4 }
 0x113   : > { %2423 = vsyncadd (%p3333_p12), [#allocation7], 4294967040 }
 0x114   : > { %2425 = dma.done.wait (%p3334_p10), [#allocation10], 512   ;;  %p3335_p11 = pmov %p3332_p4 }
 0x115   : > { %p3336_p1 = pmov %p3332_p4 }
 0x116   : > { %2427 = vsyncadd (%p3335_p11), [#allocation10], 4294966784 }
 0x117   : > { %2429 = dma.done.wait (%p3336_p1), [#allocation13], 384   ;;  %p3337_p3 = pmov %p3336_p1 }
 0x118   : > { %p3338_p2 = pmov %p3336_p1 }
 0x119   : > { %2431 = vsyncadd (%p3337_p3), [#allocation13], 4294966912 }
 0x11a   : > { %2433 = dma.done.wait (%p3338_p2), [#allocation5], 128   ;;  %p3339_p13 = pmov %p3336_p1 }
 0x11b   : > { %p3340_p6 = pmov %p3336_p1 }
 0x11c   : > { %2435 = vsyncadd (%p3339_p13), [#allocation5], 4294967168 }
 0x11d   : > { %2437 = dma.done.wait (%p3340_p6), [#allocation17], 16   ;;  %p3341_p9 = pmov %p3336_p1 }
 0x11f   : > { %2439 = vsyncadd (%p3341_p9), [#allocation17], 4294967280 }
 0x120   : > { %536 = sfence }
 0x121   : > { %v2915_v0 = vld [vmem:[%s494_s12] sm:$0xff]  ;;  %v2917_v1 = vld [vmem:[%s494_s12 + $0x8] sm:$0xff]  ;;  %vm617_vm0 = vcmask 130048   ;;  %v1728_v7 = vld [vmem:[%s2889_s9 + $0x10] sm:$0xff]  ;;  %v2479_v17 = vmov 0.0|0.0   ;;  %s1746_s13 = sld [smem:[#allocation15 + $0x80]] }
 0x122   : > { %v603_v2 = vld [vmem:[%s2889_s9] sm:$0xff]  ;;  %v604_v3 = vld [vmem:[%s2889_s9 + $0x8] sm:$0xff]  ;;  %v1729_v8 = vld [vmem:[%s2889_s9 + $0x18] sm:$0xff]  ;;  %v2932_v9 = vmul.f32 %v1728_v7, %v2915_v0  ;;  %s1752_s17 = sld [smem:[#allocation15 + $0x100]]  ;;  %s1747_s26 = sld [smem:[#allocation15 + $0x81]]  ;;  %vm2480_vm1 = vmmov 0  }
 0x123   : > { %v2922_v4 = vmul.f32 %v603_v2, %v2915_v0  ;;  %v594_v5 = vld [vmem:[#allocation8] sm:$0xff]  ;;  %v2925_v6 = vmul.f32 %v604_v3, %v2917_v1  ;;  %v2935_v10 = vmul.f32 %v1729_v8, %v2917_v1  ;;  %v596_v13 = vld [vmem:[#allocation9] sm:$0xff]  ;;  %v597_v14 = vld [vmem:[#allocation9 + $0x8] sm:$0xff]  ;;  %s1758_s3 = sld [smem:[#allocation15 + $0x180]]  ;;  %s2957_s15 = sld [smem:[#allocation15 + $0x101]]  ;;  %vm1036_vm2 = vcmask 64512  }
 0x124   : > { %1824 = vmatprep.mubr.msk.f32.mxu0 %vm617_vm0, %v594_v5  ;;  %1831 = vmatprep.mubr.msk.f32.mxu1 %vm617_vm0, %v594_v5  ;;  %v595_v15 = vld [vmem:[#allocation8 + $0x8] sm:$0xff]  ;;  %v1894_v16 = vpack.c.bf16 %v597_v14, %v596_v13  ;;  %v1730_v18 = vld [vmem:[%s2889_s9 + $0x20] sm:$0xff]  ;;  %s2955_s14 = sld [smem:[#allocation15 + $0x200]]  ;;  %s2959_s19 = sld [smem:[#allocation15 + $0x181]] }
 0x125   : > { %v1881_v11 = vpack.c.bf16 %v2925_v6, %v2922_v4  ;;  %v1885_v12 = vpack.c.bf16 %v2935_v10, %v2932_v9  ;;  %v1731_v19 = vld [vmem:[%s2889_s9 + $0x28] sm:$0xff]  ;;  %v2947_v20 = vmul.f32 %v1730_v18, %v2915_v0  ;;  %v598_v23 = vld [vmem:[#allocation11] sm:$0xff]  ;;  %s2961_s4 = sld [smem:[#allocation15 + $0x201]]  ;;  %s2963_s16 = sld [smem:[#allocation15 + $0x280]] }
 0x126   : > { %v2950_v21 = vmul.f32 %v1731_v19, %v2917_v1  ;;  %v599_v24 = vld [vmem:[#allocation11 + $0x8] sm:$0xff]  ;;  %s2965_s18 = sld [smem:[#allocation15 + $0x300]]  ;;  %s2967_s20 = sld [smem:[#allocation15 + $0x281]] }
 0x127   : > { %1882 = vmatprep.subr.bf16.mxu0 %v1881_v11  ;;  %1886 = vmatprep.subr.bf16.mxu1 %v1885_v12  ;;  %v1897_v25 = vpack.c.bf16 %v599_v24, %v598_v23  ;;  %v1082_v26 = vstv %s1746_s13  ;;  %s2969_s30 = sld [smem:[#allocation15 + $0x301]]  ;;  %s2977_s2 = sld [smem:[#allocation15 + $0x82]] }
 0x128   : > { %1884 = vmatpush3.bf16.msra.mxu0 %v1881_v11  ;;  %1888 = vmatpush3.bf16.msra.mxu1 %v1885_v12  ;;  %v1889_v22 = vpack.c.bf16 %v2950_v21, %v2947_v20  ;;  %v1107_v27 = vstv %s1752_s17  ;;  %v1083_v29 = vmul.f32 %v1082_v26, %v2922_v4  ;;  %v1086_v31 = vstv %s1747_s26  ;;  %s2983_s12 = sld [smem:[#allocation15 + $0x102]]  ;;  %s3013_s17 = sld [smem:[#allocation16 + $0x1]] }
 0x129   : > { %1893 = vmatprep.subr.bf16.mxu1 %v2479_v17  ;;  %v1132_v28 = vstv %s1758_s3  ;;  %v1084_v32 = vmul.f32 %v1082_v26, %v2925_v6  ;;  %v1108_v33 = vmul.f32 %v1107_v27, %v2922_v4  ;;  %v1109_v34 = vmul.f32 %v1107_v27, %v2925_v6  ;;  %s2985_s5 = sld [smem:[#allocation15 + $0x182]]  ;;  %s3024_s26 = sld [smem:[#allocation16 + $0x4]] }
 0x12a   : > { %1890 = vmatprep.subr.bf16.mxu0 %v1889_v22  ;;  %v1157_v30 = vstv %s2955_s14  ;;  %v1111_v35 = vstv %s2957_s15  ;;  %v1133_v36 = vmul.f32 %v1132_v28, %v2922_v4  ;;  %v1134_v37 = vmul.f32 %v1132_v28, %v2925_v6  ;;  %s2991_s28 = sld [smem:[#allocation15 + $0x202]]  ;;  %s3022_s14 = sld [smem:[#allocation16 + $0x3]] }
 0x12b   : > { %1825 = vmatmul.mubr.msk.f32.vlgmr.msra.gmra.mrb[0].mxu0 %vm617_vm0, %v595_v15  ;;  %1832 = vmatmul.mubr.msk.f32.vlgmr.msra.gmra.mrb[0].mxu1 %vm617_vm0, %v595_v15  ;;  %v1136_v38 = vstv %s2959_s19  ;;  %v1161_v39 = vstv %s2961_s4  ;;  %v1158_v40 = vmul.f32 %v1157_v30, %v2922_v4  ;;  %v1182_v41 = vstv %s2963_s16  ;;  %s2997_s9 = sld [smem:[#allocation15 + $0x282]]  ;;  %s3030_s15 = sld [smem:[#allocation16 + $0x5]] }
 0x12c   : > { %1838 = vmatprep.mubr.msk.f32.mxu0 %vm617_vm0, %v594_v5  ;;  %1895 = vmatpush3.bf16.msra.mxu1 %v1894_v16  ;;  %v1207_v42 = vstv %s2965_s18  ;;  %v1087_v43 = vmul.f32 %v1086_v31, %v2932_v9  ;;  %v1088_v44 = vmul.f32 %v1086_v31, %v2935_v10  ;;  %v1112_v45 = vmul.f32 %v1111_v35, %v2932_v9  ;;  %s2999_s13 = sld [smem:[#allocation15 + $0x302]]  ;;  %s3033_s19 = sld [smem:[#allocation16 + $0x6]] }
 0x12d   : > { %1899 = vmatprep.subr.bf16.mxu1 %v2479_v17  ;;  %1892 = vmatpush3.bf16.msra.mxu0 %v1889_v22  ;;  %v1113_v46 = vmul.f32 %v1111_v35, %v2935_v10  ;;  %v1186_v47 = vstv %s2967_s20  ;;  %v1159_v48 = vmul.f32 %v1157_v30, %v2925_v6  ;;  %v1137_v49 = vmul.f32 %v1136_v38, %v2932_v9  ;;  %s3015_s3 = sld [smem:[#allocation16 + $0x2]]  ;;  %s1057_s4 = sld [smem:[#allocation15]] }
 0x12e   : > { %1896 = vmatprep.subr.bf16.mxu0 %v2479_v17  ;;  %v1138_v50 = vmul.f32 %v1136_v38, %v2935_v10  ;;  %v1162_v51 = vmul.f32 %v1161_v39, %v2932_v9  ;;  %v1183_v52 = vmul.f32 %v1182_v41, %v2922_v4  ;;  %v1184_v53 = vmul.f32 %v1182_v41, %v2925_v6  ;;  %s1744_s16 = sld [smem:[#allocation15 + $0x1]]  ;;  %s1745_s18 = sld [smem:[#allocation15 + $0x2]] }
 0x12f   : > { %v1208_v54 = vmul.f32 %v1207_v42, %v2922_v4  ;;  %v1209_v55 = vmul.f32 %v1207_v42, %v2925_v6  ;;  %v1163_v56 = vmul.f32 %v1161_v39, %v2935_v10  ;;  %v1187_v57 = vmul.f32 %v1186_v47, %v2932_v9  ;;  %s1908_s20 = smul.u32 112, %s2877_s6  ;;  %p3343_p5 = scmp.ne.s32.totalorder %s3325_s10, 0 }
 0x130   : > { %1839 = vmatmul.mubr.msk.f32.vlgmr.msra.gmra.mrb[2].mxu0 %vm617_vm0, %v595_v15  ;;  %v1188_v58 = vmul.f32 %v1186_v47, %v2935_v10  ;;  %v1211_v59 = vstv %s2969_s30  ;;  %v1089_v60 = vadd.f32 %v1087_v43, %v1083_v29  ;;  %v1090_v61 = vadd.f32 %v1088_v44, %v1084_v32  ;;  %s1073_s30 = sld [smem:[#allocation16]] }
 0x131   : > { %1898 = vmatpush3.bf16.msra.mxu0 %v1897_v25  ;;  %v1114_v62 = vadd.f32 %v1112_v45, %v1108_v33  ;;  %v1115_v63 = vadd.f32 %v1113_v46, %v1109_v34  ;;  %v1139_v2 = vadd.f32 %v1137_v49, %v1133_v36  ;;  %v1140_v3 = vadd.f32 %v1138_v50, %v1134_v37 }
 0x132   : > { %1902 = vmatprep.subr.bf16.mxu0 %v2479_v17  ;;  %v1164_v5 = vadd.f32 %v1162_v51, %v1158_v40  ;;  %v1092_v7 = vstv %s2977_s2  ;;  %v1212_v8 = vmul.f32 %v1211_v59, %v2932_v9  ;;  %v1213_v11 = vmul.f32 %v1211_v59, %v2935_v10  ;;  %s3060_s2 = scalar_lea.vmem [#allocation18], %s1908_s20 }
 0x133   : > { %v1117_v12 = vstv %s2983_s12  ;;  %v1142_v13 = vstv %s2985_s5  ;;  %v1165_v14 = vadd.f32 %v1163_v56, %v1159_v48  ;;  %v1189_v15 = vadd.f32 %v1187_v57, %v1183_v52  ;;  %s1909_s12 = smul.u32 24, %s2877_s6 }
 0x134   : > { %v1190_v16 = vadd.f32 %v1188_v58, %v1184_v53  ;;  %v1167_v17 = vstv %s2991_s28  ;;  %v1093_v18 = vmul.f32 %v1092_v7, %v2947_v20  ;;  %v1094_v19 = vmul.f32 %v1092_v7, %v2950_v21 }
 0x135   : > { %v1192_v22 = vstv %s2997_s9  ;;  %v1217_v23 = vstv %s2999_s13  ;;  %v1118_v24 = vmul.f32 %v1117_v12, %v2947_v20  ;;  %v1119_v25 = vmul.f32 %v1117_v12, %v2950_v21  ;;  %s578_s5 = scalar_lea.vmem [#allocation19], %s1909_s12  ;;  %s1913_s9 = smul.u32 384, %s2574_s27 }
 0x136   : > { %v1143_v26 = vmul.f32 %v1142_v13, %v2947_v20  ;;  %v1144_v27 = vmul.f32 %v1142_v13, %v2950_v21  ;;  %v1214_v28 = vadd.f32 %v1212_v8, %v1208_v54  ;;  %v1215_v29 = vadd.f32 %v1213_v11, %v1209_v55  ;;  %s1424_s28 = sshll.u32 %s578_s5, 4  ;;  %s1912_s13 = smul.u32 1792, %s2574_s27  ;;  %s3114_s28 = int_to_ptr.vmem [resolvable:$true] %s1424_s28 }
 0x137   : > { %v1168_v30 = vmul.f32 %v1167_v17, %v2947_v20  ;;  %v1169_v31 = vmul.f32 %v1167_v17, %v2950_v21  ;;  %v1193_v32 = vmul.f32 %v1192_v22, %v2947_v20  ;;  %v1194_v33 = vmul.f32 %v1192_v22, %v2950_v21 }
 0x138   : > { %v1218_v34 = vmul.f32 %v1217_v23, %v2947_v20  ;;  %v1219_v35 = vmul.f32 %v1217_v23, %v2950_v21  ;;  %v1095_v36 = vadd.f32 %v1093_v18, %v1089_v60  ;;  %v1096_v37 = vadd.f32 %v1094_v19, %v1090_v61 }
 0x139   : > { %v1098_v38 = vstv %s3013_s17  ;;  %v1123_v39 = vstv %s3015_s3  ;;  %v1120_v40 = vadd.f32 %v1118_v24, %v1114_v62  ;;  %v1121_v41 = vadd.f32 %v1119_v25, %v1115_v63 }
 0x13a   : > { %v1145_v42 = vadd.f32 %v1143_v26, %v1139_v2  ;;  %v1146_v43 = vadd.f32 %v1144_v27, %v1140_v3  ;;  %v1148_v44 = vstv %s3022_s14  ;;  %v1170_v45 = vadd.f32 %v1168_v30, %v1164_v5  ;;  %s3342_s14 = sld [smem:[#allocation41_spill]] }
 0x13b   : > { %v1171_v46 = vadd.f32 %v1169_v31, %v1165_v14  ;;  %v1173_v47 = vstv %s3024_s26  ;;  %v1195_v48 = vadd.f32 %v1193_v32, %v1189_v15  ;;  %v1196_v49 = vadd.f32 %v1194_v33, %v1190_v16 }
 0x13c   : > { %v1220_v50 = vadd.f32 %v1218_v34, %v1214_v28  ;;  %v1221_v51 = vadd.f32 %v1219_v35, %v1215_v29  ;;  %v1099_v52 = vadd.f32 %v1098_v38, %v1095_v36  ;;  %v1100_v53 = vadd.f32 %v1098_v38, %v1096_v37 }
 0x13d   : > { %v1198_v54 = vstv %s3030_s15  ;;  %v1223_v55 = vstv %s3033_s19  ;;  %v1124_v56 = vadd.f32 %v1123_v39, %v1120_v40  ;;  %v1125_v57 = vadd.f32 %v1123_v39, %v1121_v41  ;;  %s3124_s15 = scalar_lea.sflag [#allocation20], %s499_s0  ;;  %s2284_s19 = scalar_lea.vmem %s3114_s28, 384 }
 0x13e   : > { %v1149_v58 = vadd.f32 %v1148_v44, %v1145_v42  ;;  %v1150_v59 = vadd.f32 %v1148_v44, %v1146_v43  ;;  %v1174_v60 = vadd.f32 %v1173_v47, %v1170_v45  ;;  %v1175_v61 = vadd.f32 %v1173_v47, %v1171_v46  ;;  %v600_v42 = vld [vmem:[#allocation12] sm:$0xff]  ;;  %v601_v43 = vld [vmem:[#allocation14] sm:$0xff]  ;;  %v602_v44 = vld [vmem:[#allocation14 + $0x8] sm:$0xff]  ;;  %p2285_p0 = scmp.ne.s32.totalorder %s3114_s28, %s2284_s19 }
 0x13f   : > { %v1199_v62 = vadd.f32 %v1198_v54, %v1195_v48  ;;  %v1200_v63 = vadd.f32 %v1198_v54, %v1196_v49  ;;  %v1224_v2 = vadd.f32 %v1223_v55, %v1220_v50  ;;  %v1225_v3 = vadd.f32 %v1223_v55, %v1221_v51 }
 0x140   : > { %v1101_v5 = vmax.f32 %v1099_v52, 0.0  ;;  %v1102_v7 = vmax.f32 %v1100_v53, 0.0  ;;  %v1126_v8 = vmax.f32 %v1124_v56, 0.0  ;;  %v1127_v11 = vmax.f32 %v1125_v57, 0.0  ;;  %s3120_s26 = scalar_lea.hbm %s3342_s14, %s1913_s9  ;;  %p2286_p7 = pnand %p2285_p0, %p3343_p5 }
 0x141   : > { %v1151_v12 = vmax.f32 %v1149_v58, 0.0  ;;  %v1152_v13 = vmax.f32 %v1150_v59, 0.0  ;;  %v1176_v14 = vmax.f32 %v1174_v60, 0.0  ;;  %v1177_v15 = vmax.f32 %v1175_v61, 0.0 }
 0x142   : > { %v1201_v16 = vmax.f32 %v1199_v62, 0.0  ;;  %v1202_v17 = vmax.f32 %v1200_v63, 0.0  ;;  %v1226_v18 = vmax.f32 %v1224_v2, 0.0  ;;  %v1227_v19 = vmax.f32 %v1225_v3, 0.0  ;;  %1750 = vst.msk [vmem:[%s3060_s2 + $0x10] sm:$0xff] %vm617_vm0, %v1101_v5  ;;  %1751 = vst.msk [vmem:[%s3060_s2 + $0x18] sm:$0xff] %vm617_vm0, %v1102_v7  ;;  %p2287_p8 = pneg %p2286_p7 }
 0x143   : > { %v2481_v22 = vmov 0.0   ;;  %v1058_v23 = vstv %s1057_s4  ;;  %v1062_v24 = vstv %s1744_s16  ;;  %v1068_v29 = vstv %s1745_s18  ;;  %1756 = vst.msk [vmem:[%s3060_s2 + $0x20] sm:$0xff] %vm617_vm0, %v1126_v8  ;;  %s2482_s4 = smov [#allocation19]  }
 0x144   : > { %1858 = vmatprep.mubr.msk.f32.mxu0 %vm2480_vm1, %v2481_v22  ;;  %1845 = vmatprep.mubr.msk.f32.mxu1 %vm2480_vm1, %v2481_v22  ;;  %v1059_v25 = vmul.f32 %v1058_v23, %v2922_v4  ;;  %v1060_v26 = vmul.f32 %v1058_v23, %v2925_v6  ;;  %v1063_v27 = vmul.f32 %v1062_v24, %v2932_v9  ;;  %v1074_v9 = vstv %s1073_s30  ;;  %s2288_s16 = sshll.u32 %s2482_s4, 4  ;;  %s2289_s16 = int_to_ptr.vmem [resolvable:$false] %s2288_s16 }
 0x145   : > { %v1064_v28 = vmul.f32 %v1062_v24, %v2935_v10  ;;  %v1069_v32 = vmul.f32 %v1068_v29, %v2947_v20  ;;  %v1070_v33 = vmul.f32 %v1068_v29, %v2950_v21  ;;  %1757 = vst.msk [vmem:[%s3060_s2 + $0x28] sm:$0xff] %vm617_vm0, %v1127_v11  ;;  %1762 = vst.msk [vmem:[%s3060_s2 + $0x30] sm:$0xff] %vm617_vm0, %v1151_v12  ;;  %s2290_s18 = scalar_lea.vmem %s2289_s16, 768  ;;  %p2291_p4 = scmp.lt.s32.totalorder %s3114_s28, %s2289_s16 }
 0x146   : > { %v1065_v30 = vadd.f32 %v1063_v27, %v1059_v25  ;;  %1763 = vst.msk [vmem:[%s3060_s2 + $0x38] sm:$0xff] %vm617_vm0, %v1152_v13  ;;  %1768 = vst.msk [vmem:[%s3060_s2 + $0x40] sm:$0xff] %vm617_vm0, %v1176_v14  ;;  %v1903_v45 = vpack.c.bf16 %v602_v44, %v601_v43  ;;  %p2292_p12 = scmp.lt.s32.totalorder %s2290_s18, %s2284_s19 }
 0x147   : > { %v1066_v31 = vadd.f32 %v1064_v28, %v1060_v26  ;;  %1769 = vst.msk [vmem:[%s3060_s2 + $0x48] sm:$0xff] %vm617_vm0, %v1177_v15  ;;  %1774 = vst.msk [vmem:[%s3060_s2 + $0x50] sm:$0xff] %vm617_vm0, %v1201_v16 }
 0x148   : > { %1775 = vst.msk [vmem:[%s3060_s2 + $0x58] sm:$0xff] %vm617_vm0, %v1202_v17  ;;  %1780 = vst.msk [vmem:[%s3060_s2 + $0x60] sm:$0xff] %vm617_vm0, %v1226_v18  ;;  %v1071_v4 = vadd.f32 %v1069_v32, %v1065_v30  ;;  %p2293_p10 = por %p2292_p12, %p2291_p4 }
 0x149   : > { %1781 = vst.msk [vmem:[%s3060_s2 + $0x68] sm:$0xff] %vm617_vm0, %v1227_v19  ;;  %v1072_v6 = vadd.f32 %v1070_v33, %v1066_v31 }
 0x14a   : > { %v1075_v10 = vadd.f32 %v1074_v9, %v1071_v4  ;;  %p2294_p11 = pnand %p2293_p10, %p2287_p8 }
 0x14b   : > { %v1076_v20 = vadd.f32 %v1074_v9, %v1072_v6 }
 0x14c   : > { %v1077_v21 = vmax.f32 %v1075_v10, 0.0 }
 0x14d   : > { %v1078_v34 = vmax.f32 %v1076_v20, 0.0 }
 0x14e   : > { %1079 = vst.msk [vmem:[%s3060_s2] sm:$0xff] %vm617_vm0, %v1077_v21  ;;  %v1231_v35 = vmul.f32 %v1077_v21, %v2915_v0 }
 0x14f   : > { %1080 = vst.msk [vmem:[%s3060_s2 + $0x8] sm:$0xff] %vm617_vm0, %v1078_v34  ;;  %v1232_v36 = vmul.f32 %v1078_v34, %v2917_v1 }
 0x151   : > { %v1900_v37 = vpack.c.bf16 %v1232_v36, %v1231_v35 }
 0x1fe   : > { %v1826_v38 = vpop.f32.mrb[0].mxu0  ;;  %v1833_v40 = vpop.f32.mrb[0].mxu1 }
 0x1ff   : > { %v690_v39 = vpop.f32.mrb[1].mxu0  ;;  %1859 = vmatmul.mubr.msk.f32.vlgmr.msra.gmra.mrb[4].mxu0 %vm617_vm0, %v1826_v38  ;;  %v765_v41 = vpop.f32.mrb[1].mxu1 }
 0x200   : > { %1846 = vmatmul.mubr.msk.f32.vlgmr.msra.gmra.mrb[2].mxu1 %vm617_vm0, %v690_v39  ;;  %1861 = vmatprep.mubr.msk.f32.mxu0 %vm2480_vm1, %v2481_v22 }
 0x201   : > { %1901 = vmatpush3.bf16.msra.mxu1 %v1900_v37  ;;  %1848 = vmatprep.mubr.msk.f32.mxu1 %vm2480_vm1, %v2481_v22 }
 0x202   : > { %1904 = vmatpush3.bf16.msra.mxu0 %v1903_v45 }
 0x203   : > { %1862 = vmatmul.mubr.msk.f32.gmra.mrb[6].mxu0 %vm617_vm0, %v1833_v40  ;;  %v1840_v0 = vpop.f32.mrb[2].mxu0 }
 0x204   : > { %1849 = vmatmul.mubr.msk.f32.gmra.mrb[4].mxu1 %vm617_vm0, %v765_v41  ;;  %1864 = vmatprep.mubr.msk.f32.mxu0 %vm2480_vm1, %v2481_v22  ;;  %v840_v1 = vpop.f32.mrb[3].mxu0 }
 0x205   : > { %1851 = vmatprep.mubr.msk.f32.mxu1 %vm2480_vm1, %v2481_v22 }
 0x207   : > { %1865 = vmatmul.mubr.msk.f32.gmra.mrb[8].mxu0 %vm617_vm0, %v1840_v0 }
 0x208   : > { %1852 = vmatmul.mubr.msk.f32.gmra.mrb[6].mxu1 %vm617_vm0, %v840_v1  ;;  %1878 = vmatprep.mubr.msk.f32.mxu0 %vm2480_vm1, %v2481_v22 }
 0x209   : > { %1871 = vmatprep.mubr.msk.f32.mxu1 %vm2480_vm1, %v2481_v22 }
 0x20c   : > { %1872 = vmatmul.mubr.msk.f32.vlgmr.msra.gmra.mrb[8].mxu1 %vm617_vm0, %v600_v42 }
 0x2d2   : > { %v1016_v46 = vpop.f32.mrb[4].mxu0 }
 0x2d3   : > { %v1030_v47 = vand.u32 2147483647, %v1016_v46  ;;  %v924_v48 = vpop.f32.mrb[2].mxu1  ;;  %v1860_v49 = vpop.f32.mrb[5].mxu0 }
 0x2d4   : > { %v938_v50 = vand.u32 2147483647, %v924_v48  ;;  %v1847_v51 = vpop.f32.mrb[3].mxu1 }
 0x2d6   : > { %v1033_v52 = vadd.f32 %v1030_v47, %v938_v50  ;;  %v1021_v53 = vpop.f32.mrb[6].mxu0 }
 0x2d7   : > { %v1031_v54 = vand.u32 2147483647, %v1021_v53  ;;  %v929_v55 = vpop.f32.mrb[4].mxu1  ;;  %v1863_v56 = vpop.f32.mrb[7].mxu0 }
 0x2d8   : > { %1037 = vst.msk [vmem:[%s578_s5] sm:$0xff] %vm1036_vm2, %v1033_v52  ;;  %v939_v57 = vand.u32 2147483647, %v929_v55  ;;  %v1850_v58 = vpop.f32.mrb[5].mxu1  ;;  %v1040_v60 = vsel %vm1036_vm2, %v1033_v52, -inf }
 0x2da   : > { %v1034_v59 = vadd.f32 %v1031_v54, %v939_v57  ;;  %v1026_v63 = vpop.f32.mrb[8].mxu0 }
 0x2db   : > { %v1032_v2 = vand.u32 2147483647, %v1026_v63  ;;  %v934_v3 = vpop.f32.mrb[6].mxu1  ;;  %v1866_v5 = vpop.f32.mrb[9].mxu0 }
 0x2dc   : > { %1038 = vst.msk [vmem:[%s578_s5 + $0x8] sm:$0xff] %vm1036_vm2, %v1034_v59  ;;  %v1041_v61 = vsel %vm1036_vm2, %v1034_v59, -inf  ;;  %v940_v7 = vand.u32 2147483647, %v934_v3  ;;  %v1853_v8 = vpop.f32.mrb[7].mxu1 }
 0x2dd   : > { %v1043_v62 = vmax.f32 %v1040_v60, %v1041_v61 }
 0x2de   : > { %v1035_v11 = vadd.f32 %v1032_v2, %v940_v7 }
 0x2df   : > { %v1302_v12 = vpop.f32.mrb[8].mxu1 }
 0x2e0   : > { %1039 = vst.msk [vmem:[%s578_s5 + $0x10] sm:$0xff] %vm1036_vm2, %v1035_v11  ;;  %v1873_v13 = vpop.f32.mrb[9].mxu1  ;;  %1879 = vmatmul.mubr.msk.f32.vlgmr.msra.gmra.mrb[10].mxu0 %vm617_vm0, %v1302_v12  ;;  %v1042_v14 = vsel %vm1036_vm2, %v1035_v11, -inf }
 0x2e1   : > { %v1044_v15 = vmax.f32 %v1043_v62, %v1042_v14 }
 0x2e3   : > { %1045 = vmax.xlane.f32.xlu0 %v1044_v15 }
 0x2e4   : > { %2297 = shalt.err (!%p2294_p11)
}
 0x2e5   : > { %s2298_s0 = scalar_lea.hbm %s3120_s26, 384  ;;  %s2302_s12 = scalar_lea.hbm %s3342_s14, 768 }
 0x2e6   : > { %p2299_p1 = scmp.ne.s32.totalorder %s3120_s26, %s2298_s0  ;;  %p2303_p13 = scmp.lt.u32.totalorder %s3120_s26, %s3342_s14 }
 0x2e7   : > { %p2304_p6 = scmp.lt.u32.totalorder %s2302_s12, %s2298_s0  ;;  %p2306_p0 = scmp.lt.u32.totalorder %s2298_s0, %s3120_s26 }
 0x2e8   : > { %p2300_p3 = pnand %p2299_p1, %p3343_p5 }
 0x2e9   : > { %p2305_p9 = por %p2304_p6, %p2303_p13 }
 0x2ea   : > { %p2301_p2 = pneg %p2300_p3 }
 0x2eb   : > { %p2307_p7 = por %p2306_p0, %p2305_p9 }
 0x2ed   : > { %p2308_p8 = pnand %p2307_p7, %p2301_p2 }
 0x2ef   : > { %2311 = shalt.err (!%p2308_p8)
}
 0x2f0   : > { %s2483_s17 = smov 128   ;;  %s2484_s3 = smov 8  }
 0x2f1   : > { %1947 = dma.vmem_to_hbm [thread:$0]  (%p3343_p5), %s3114_s28, 384, %s3120_s26, %s3124_s15, %s2483_s17, %s2483_s17, %s2484_s3  }
 0x2f2   : > { %s3344_s16 = sld [smem:[#allocation40_spill]]  ;;  %s1408_s0 = sshll.u32 %s3060_s2, 4  ;;  %s3159_s0 = int_to_ptr.vmem [resolvable:$true] %s1408_s0 }
 0x2f3   : > { %s1381_s20 = scalar_lea.sflag [#allocation4], %s2877_s6  ;;  %s2312_s30 = scalar_lea.vmem %s3159_s0, 1792 }
 0x2f4   : > { %p2313_p4 = scmp.ne.s32.totalorder %s3159_s0, %s2312_s30  ;;  %s2485_s12 = smov [#allocation18]  }
 0x2f5   : > { %s2316_s28 = sshll.u32 %s2485_s12, 4  ;;  %s2317_s28 = int_to_ptr.vmem [resolvable:$false] %s2316_s28 }
 0x2f6   : > { %p2314_p12 = pnand %p2313_p4, %p3343_p5  ;;  %s2318_s26 = scalar_lea.vmem %s2317_s28, 3584 }
 0x2f7   : > { %p2319_p11 = scmp.lt.s32.totalorder %s3159_s0, %s2317_s28  ;;  %p2320_p1 = scmp.lt.s32.totalorder %s2318_s26, %s2312_s30 }
 0x2f8   : > { %s3156_s18 = scalar_lea.hbm %s3344_s16, %s1912_s13  ;;  %p2315_p10 = pneg %p2314_p12 }
 0x2f9   : > { %p2321_p3 = por %p2320_p1, %p2319_p11 }
 0x2fb   : > { %p2322_p2 = pnand %p2321_p3, %p2315_p10 }
 0x2fd   : > { %2325 = shalt.err (!%p2322_p2)
}
 0x2fe   : > { %s2326_s2 = scalar_lea.hbm %s3156_s18, 1792  ;;  %s2330_s9 = scalar_lea.hbm %s3344_s16, 3584 }
 0x2ff   : > { %p2327_p13 = scmp.ne.s32.totalorder %s3156_s18, %s2326_s2  ;;  %p2331_p0 = scmp.lt.u32.totalorder %s3156_s18, %s3344_s16 }
 0x300   : > { %p2332_p7 = scmp.lt.u32.totalorder %s2330_s9, %s2326_s2  ;;  %p2334_p4 = scmp.lt.u32.totalorder %s2326_s2, %s3156_s18 }
 0x301   : > { %p2328_p6 = pnand %p2327_p13, %p3343_p5 }
 0x302   : > { %p2333_p8 = por %p2332_p7, %p2331_p0 }
 0x303   : > { %p2329_p9 = pneg %p2328_p6 }
 0x304   : > { %p2335_p12 = por %p2334_p4, %p2333_p8 }
 0x306   : > { %p2336_p10 = pnand %p2335_p12, %p2329_p9 }
 0x308   : > { %2339 = shalt.err (!%p2336_p10)
}
 0x309   : > { %1946 = dma.vmem_to_hbm [thread:$0]  (%p3343_p5), %s3159_s0, 1792, %s3156_s18, %s1381_s20, %s2483_s17, %s2483_s17, %s2484_s3   ;;  %vm1055_vm3 = vcmask 0  }
 0x30a   : > { %s1727_s30 = sshll.u32 %s2877_s6, 3  ;;  %s1788_s12 = sshll.u32 %s2574_s27, 4 }
 0x30b   : > { %s591_s28 = scalar_lea.vmem [#allocation22], %s2877_s6  ;;  %s3345_s5 = sld [smem:[#allocation43_spill]] }
 0x30c   : > { %s1453_s26 = sshll.u32 %s591_s28, 4  ;;  %s3198_s18 = scalar_lea.vmem [#allocation21], %s1727_s30  ;;  %s3196_s26 = int_to_ptr.vmem [resolvable:$true] %s1453_s26 }
 0x30d   : > { %s1440_s0 = sshll.u32 %s3198_s18, 4  ;;  %s1787_s20 = sshll.u32 %s2574_s27, 7  ;;  %s3226_s0 = int_to_ptr.vmem [resolvable:$true] %s1440_s0 }
 0x30e   : > { %s1396_s9 = scalar_lea.sflag [#allocation23], %s2877_s6  ;;  %s2340_s19 = scalar_lea.vmem %s3196_s26, 16 }
 0x30f   : > { %p2341_p11 = scmp.ne.s32.totalorder %s3196_s26, %s2340_s19  ;;  %s2486_s4 = smov [#allocation22]  }
 0x311   : > { %s3194_s17 = scalar_lea.hbm %s3345_s5, %s1788_s12  ;;  %p2342_p1 = pnand %p2341_p11, %p3343_p5 }
 0x312   : > { %s2344_s12 = sshll.u32 %s2486_s4, 4  ;;  %s2345_s12 = int_to_ptr.vmem [resolvable:$false] %s2344_s12 }
 0x313   : > { %p2343_p3 = pneg %p2342_p1  ;;  %s2346_s2 = scalar_lea.vmem %s2345_s12, 32 }
 0x314   : > { %p2347_p2 = scmp.lt.s32.totalorder %s3196_s26, %s2345_s12  ;;  %p2348_p13 = scmp.lt.s32.totalorder %s2346_s2, %s2340_s19 }
 0x316   : > { %p2349_p6 = por %p2348_p13, %p2347_p2 }
 0x318   : > { %p2350_p9 = pnand %p2349_p6, %p2343_p3 }
 0x370   : > { %v1046_v16 = vpop.xlane.xlu0 %1045 }
 0x371   : > { %v1047_v17 = vrot.slane %v1046_v16, 4 }
 0x373   : > { %v1048_v18 = vmax.f32 %v1046_v16, %v1047_v17 }
 0x375   : > { %v1049_v19 = vrot.slane %v1048_v18, 2 }
 0x377   : > { %v1050_v22 = vmax.f32 %v1048_v18, %v1049_v19 }
 0x379   : > { %v1051_v23 = vrot.slane %v1050_v22, 1 }
 0x37b   : > { %v1052_v24 = vmax.f32 %v1050_v22, %v1051_v23 }
 0x37d   : > { %1910 = vpush %v1052_v24 }
 0x3ae   : > { %s1911_s3 = spop %1910 }
 0x3af   : > { %v1054_v25 = vstv %s1911_s3 }
 0x3b0   : > { %1056 = vst.msk [vmem:[%s591_s28] sm:$0x1] %vm1055_vm3, %v1054_v25 }
 0x3b1   : > { %2353 = shalt.err (!%p2350_p9)
}
 0x3b2   : > { %s2354_s6 = scalar_lea.hbm %s3194_s17, 16  ;;  %s2358_s13 = scalar_lea.hbm %s3345_s5, 32 }
 0x3b3   : > { %p2355_p0 = scmp.ne.s32.totalorder %s3194_s17, %s2354_s6  ;;  %p2359_p4 = scmp.lt.u32.totalorder %s3194_s17, %s3345_s5 }
 0x3b4   : > { %p2360_p12 = scmp.lt.u32.totalorder %s2358_s13, %s2354_s6  ;;  %p2362_p11 = scmp.lt.u32.totalorder %s2354_s6, %s3194_s17 }
 0x3b5   : > { %p2356_p7 = pnand %p2355_p0, %p3343_p5 }
 0x3b6   : > { %p2361_p10 = por %p2360_p12, %p2359_p4 }
 0x3b7   : > { %p2357_p8 = pneg %p2356_p7 }
 0x3b8   : > { %p2363_p1 = por %p2362_p11, %p2361_p10 }
 0x3ba   : > { %p2364_p3 = pnand %p2363_p1, %p2357_p8 }
 0x3bc   : > { %2367 = shalt.err (!%p2364_p3)
}
 0x3bd   : > { %1949 = dma.vmem_to_hbm [thread:$0]  (%p3343_p5), %s3196_s26, 16, %s3194_s17, %s1396_s9   ;;  %v1375_v26 = vpop.f32.mrb[10].mxu0 }
 0x3be   : > { %s3346_s2 = sld [smem:[#allocation42_spill]]  ;;  %1379 = vst.msk [vmem:[%s3198_s18] sm:$0xff] %vm1036_vm2, %v1375_v26  ;;  %v1880_v27 = vpop.f32.mrb[11].mxu0  ;;  %s2368_s30 = scalar_lea.vmem %s3226_s0, 128 }
 0x3bf   : > { %p2369_p2 = scmp.ne.s32.totalorder %s3226_s0, %s2368_s30  ;;  %s2487_s26 = smov [#allocation21]  }
 0x3c0   : > { %s2372_s17 = sshll.u32 %s2487_s26, 4  ;;  %s2373_s17 = int_to_ptr.vmem [resolvable:$false] %s2372_s17 }
 0x3c1   : > { %p2370_p13 = pnand %p2369_p2, %p3343_p5  ;;  %s2374_s27 = scalar_lea.vmem %s2373_s17, 256 }
 0x3c2   : > { %p2375_p9 = scmp.lt.s32.totalorder %s3226_s0, %s2373_s17  ;;  %p2376_p0 = scmp.lt.s32.totalorder %s2374_s27, %s2368_s30 }
 0x3c3   : > { %p2371_p6 = pneg %p2370_p13 }
 0x3c4   : > { %s3233_s6 = scalar_lea.hbm %s3346_s2, %s1787_s20  ;;  %p2377_p7 = por %p2376_p0, %p2375_p9 }
 0x3c6   : > { %p2378_p8 = pnand %p2377_p7, %p2371_p6 }
 0x3c8   : > { %2381 = shalt.err (!%p2378_p8)
}
 0x3c9   : > { %s2382_s18 = scalar_lea.hbm %s3233_s6, 128  ;;  %s2386_s28 = scalar_lea.hbm %s3346_s2, 256 }
 0x3ca   : > { %p2383_p4 = scmp.ne.s32.totalorder %s3233_s6, %s2382_s18  ;;  %p2387_p11 = scmp.lt.u32.totalorder %s3233_s6, %s3346_s2 }
 0x3cb   : > { %p2388_p1 = scmp.lt.u32.totalorder %s2386_s28, %s2382_s18  ;;  %p2390_p2 = scmp.lt.u32.totalorder %s2382_s18, %s3233_s6 }
 0x3cc   : > { %p2384_p12 = pnand %p2383_p4, %p3343_p5 }
 0x3cd   : > { %p2389_p3 = por %p2388_p1, %p2387_p11 }
 0x3ce   : > { %p2385_p10 = pneg %p2384_p12 }
 0x3cf   : > { %p2391_p13 = por %p2390_p2, %p2389_p3 }
 0x3d1   : > { %p2392_p6 = pnand %p2391_p13, %p2385_p10 }
 0x3d3   : > { %2395 = shalt.err (!%p2392_p6)
}
 0x3d4   : > { %1948 = dma.vmem_to_hbm [thread:$0]  (%p3343_p5), %s3226_s0, 128, %s3233_s6, %s3124_s15  }
 0x3d5 PF: > { %s1465_s4 = sand.u32 1, %s2454_s21   ;;  %p3347_p9 = scmp.ne.s32.totalorder %s3326_s29, 0 }
 0x3d6   : > { %p3348_p0 = scmp.ge.s32.totalorder %s2466_s24, 2  ;;  %s1466_s19 = scalar_lea.sflag [#allocation4], %s1465_s4 }
 0x3d8   : > { %p1984_p7 = pnand %p3348_p0, %p3347_p9 }
 0x3da   : > { %2441 = dma.done.wait (!%p1984_p7), %s1466_s19, 1792  }
 0x3db   : > { %2443 = vsyncadd (!%p1984_p7), %s1466_s19, 4294965504  ;;  %s3349_s12 = sadd.s32 4294967294, %s2466_s24  }
 0x3dc   : > { %s1474_s30 = sand.u32 1, %s3349_s12  }
 0x3dd   : > { %s1475_s26 = scalar_lea.sflag [#allocation20], %s1474_s30 }
 0x3de   : > { %2445 = dma.done.wait (!%p1984_p7), %s1475_s26, 512  }
 0x3df   : > { %2447 = vsyncadd (!%p1984_p7), %s1475_s26, 4294966784  ;;  %s1493_s10 = scalar_lea.sflag [#allocation23], %s1465_s4 }
 0x3e0   : > { %2449 = dma.done.wait (!%p1984_p7), %s1493_s10, 16  }
 0x3e1   : > { %2451 = vsyncadd (!%p1984_p7), %s1493_s10, 4294967280  ;;  %p39_p5 = scmp.ge.s32.totalorder %s2755_s25, 4   ;;  %s3350_s21 = smov %s2458_s22 }
 0x3e2   : > { %s3351_s22 = smov %s2462_s23  ;;  %s3352_s23 = smov %s2767_s11 }
 0x3e3   : > { %s3353_s24 = smov %s2755_s25  ;;  %41 = sbr.rel (!%p39_p5) target bundleno = 26 (0x1a), region = 200 }
 0x3ea   :  { %1497 = vsyncpa [#allocation3], 1 }
 0x3eb   :  { %1499 = vsyncpa [#allocation3 + $0x1], 1 }
 0x3ec   :  { %1500 = vsyncpa [#allocation7], 1 }
 0x3ed   :  { %1502 = vsyncpa [#allocation7 + $0x1], 1 }
 0x3ee   :  { %1503 = vsyncpa [#allocation10], 1 }
 0x3ef   :  { %1504 = vsyncpa [#allocation13], 1 }
 0x3f0   :  { %1505 = vsyncpa [#allocation4], 1 }
 0x3f1   :  { %1507 = vsyncpa [#allocation4 + $0x1], 1 }
 0x3f2   :  { %1508 = vsyncpa [#allocation20], 1 }
 0x3f3   :  { %1510 = vsyncpa [#allocation20 + $0x1], 1 }
 0x3f4   :  { %1511 = vsyncpa [#allocation23], 1 }
 0x3f5   :  { %1513 = vsyncpa [#allocation23 + $0x1], 1 }
 0x3f6   :  { %1514 = vsyncpa [#allocation5], 1 }
 0x3f7   :  { %1516 = vsyncpa [#allocation5 + $0x1], 1 }
 0x3f8   :  { %1517 = vsyncpa [#allocation17], 1 }

</bundles_post_ra>
